<compile_context>
chip_gen: v6e
topology: v6e:2x2x1
jax: 0.10.0
libtpu: 0.0.40
codegen_flags: <defaults>
</compile_context>

<pallas_src>
import functools
import math

import jax
import jax.numpy as jnp
import numpy as np
from jax.experimental import pallas as pl
from jax.experimental.pallas import tpu as pltpu


EPS = 1e-05


def _sbgm_tile_kernel(t_ref, x0_ref, x1_ref,
                      wte_ref, bte_ref, w1_ref, b1_ref, w2_ref, b2_ref,
                      psig_ref, pres_ref,
                      *, sigma, tb, hidden_tanh_bf16):
    i = pl.program_id(0)

    # t is VMEM-resident (full (B,1) block, constant index_map); slice our tile.
    row0 = pl.multiple_of(i * tb, tb)
    t = t_ref[pl.ds(row0, tb), :].astype(jnp.float32)       # (TB, 1)
    x0 = x0_ref[...].astype(jnp.float32)                    # (TB, D)
    x1 = x1_ref[...].astype(jnp.float32)                    # (TB, D)

    log_sigma = jnp.float32(math.log(sigma))
    inv_2log = jnp.float32(1.0 / (2.0 * math.log(sigma)))

    # lambda_t(t) = sigma_fun(t)^2 = 1/(2 ln sigma) * (sigma^(2t) - 1)
    sig2_t = inv_2log * (jnp.exp((2.0 * log_sigma) * t) - 1.0)   # (TB, 1)
    sig_t = jnp.sqrt(sig2_t)                                     # (TB, 1)

    # x_t = x_0 + sigma_fun(t) * x_1
    x_t = x0 + sig_t * x1                                        # (TB, D)

    # time embedding: tanh(t @ W_te + b_te);  W_te stored as (1, D)
    t_embd = jnp.tanh(t * wte_ref[...] + bte_ref[...])           # (TB, D)

    # snet: Linear(D,H) -> Tanh -> Linear(H,D).  bf16 MXU operands, f32 acc.
    z = (x_t + t_embd).astype(jnp.bfloat16)
    pre1 = jnp.dot(z, w1_ref[...],
                   preferred_element_type=jnp.float32) + b1_ref[...]   # (TB, H) f32
    if hidden_tanh_bf16:
        # v6e/v7x: EUP supports bf16 -> tanh directly produces the bf16 MXU operand
        h = jnp.tanh(pre1.astype(jnp.bfloat16))
    else:
        # v5e: no bf16 VPU/EUP -> keep tanh in f32, cast afterwards
        h = jnp.tanh(pre1).astype(jnp.bfloat16)
    s = jnp.dot(h, w2_ref[...],
                preferred_element_type=jnp.float32) + b2_ref[...]      # (TB, D) f32

    # x_pred + x_1 = x_1 - sigma_fun(t) * s
    resid = x1 - sig_t * s

    # Per-tile partial sums.  resid^2 is reduced only along the sublane (batch)
    # axis -> lane-dense (1,1,D) store; the cross-lane reduce happens once in
    # the wrapper.  sum(lambda_t) is a single scalar.
    pres_ref[...] = jnp.sum(resid * resid, axis=0).reshape(pres_ref.shape)
    psig_ref[...] = jnp.sum(sig2_t).reshape(psig_ref.shape)


def _tpu_vmem_capacity_bytes():
    """Generation-aware VMEM capacity (64 MiB on v7x, 128 MiB on v4/v5/v6)."""
    try:
        info = pltpu.get_tpu_info()
        cap = getattr(info, "vmem_capacity_bytes", None)
        if cap:
            return int(cap)
    except Exception:
        pass
    try:
        kind = jax.devices()[0].device_kind.lower()
    except Exception:
        kind = ""
    if "v7" in kind:
        return 64 * 1024 * 1024
    if "v4" in kind or "v5" in kind or "v6" in kind:
        return 128 * 1024 * 1024
    return 64 * 1024 * 1024   # unknown: be conservative


def _hidden_tanh_bf16_supported():
    """bf16 EUP tanh only on v6e / v7x; v5e (and unknown) stay f32."""
    try:
        kind = jax.devices()[0].device_kind.lower()
    except Exception:
        return False
    return ("v6" in kind) or ("v7" in kind)


def _pick_block_b(batch, max_rows):
    """Largest divisor of `batch` that is a multiple of 8 and <= max_rows.

    Bigger tiles win here (fewer ~0.35us grid steps, better MXU row fill);
    the demo shape collapses to a single step (TB == batch).
    """
    if batch % 8 != 0:
        return batch            # full-batch single step (block == full array dims)
    limit = min(batch, max(8, (max_rows // 8) * 8))
    best = 8
    for tb in range(8, limit + 1, 8):
        if batch % tb == 0:
            best = tb
    return best


@functools.lru_cache(maxsize=None)
def _build_sbgm_call(B, D, H, TB, sigma, hidden_tanh_bf16, x_itemsize):
    """Build (and cache) the pallas_call for a given static configuration."""
    nb = B // TB

    kernel = functools.partial(_sbgm_tile_kernel, sigma=sigma, tb=TB,
                               hidden_tanh_bf16=hidden_tanh_bf16)

    # Working-set estimate: double-buffered batch tiles + resident t +
    # (double-buffered) weights + activation intermediates + outputs.
    cap = _tpu_vmem_capacity_bytes()
    tile_bytes = 2 * (2 * TB * D * x_itemsize)                  # x0 + x1
    t_bytes = 2 * B * 128 * 4                                   # (B,1) lane-padded
    weight_bytes = 2 * ((D * H + H * D) * 2 + (3 * D + H) * 4)  # bf16 W, f32 biases
    act_bytes = TB * (D + H) * 16                               # f32 + bf16 copies
    out_bytes = 2 * (D + 128) * 4
    working = tile_bytes + t_bytes + weight_bytes + act_bytes + out_bytes
    vmem_limit = int(min(max(2 * working + (4 << 20), 16 << 20),
                         int(0.85 * cap)))

    cost = pl.CostEstimate(
        flops=int(4 * B * D * H + 12 * B * D),
        transcendentals=int(B * (D + H + 1)),
        bytes_accessed=int(x_itemsize * 2 * B * D + 4 * B
                           + 2 * (D * H + H * D) + 4 * (3 * D + H)
                           + 4 * nb * (D + 1)),
    )

    grid_spec = pltpu.PrefetchScalarGridSpec(
        num_scalar_prefetch=0,
        grid=(nb,),
        in_specs=[
            pl.BlockSpec((B, 1), lambda i: (0, 0)),    # t    (VMEM-resident, untiled)
            pl.BlockSpec((TB, D), lambda i: (i, 0)),   # x0   (streamed per tile)
            pl.BlockSpec((TB, D), lambda i: (i, 0)),   # x1   (streamed per tile)
            pl.BlockSpec((1, D), lambda i: (0, 0)),    # wte  (VMEM-resident)
            pl.BlockSpec((1, D), lambda i: (0, 0)),    # bte
            pl.BlockSpec((D, H), lambda i: (0, 0)),    # w1
            pl.BlockSpec((1, H), lambda i: (0, 0)),    # b1
            pl.BlockSpec((H, D), lambda i: (0, 0)),    # w2
            pl.BlockSpec((1, D), lambda i: (0, 0)),    # b2
        ],
        out_specs=[
            pl.BlockSpec((1, 1, 1), lambda i: (i, 0, 0)),   # per-tile sum(lambda_t)
            pl.BlockSpec((1, 1, D), lambda i: (i, 0, 0)),   # per-tile colsum(resid^2)
        ],
    )

    return pl.pallas_call(
        kernel,
        out_shape=(jax.ShapeDtypeStruct((nb, 1, 1), jnp.float32),
                   jax.ShapeDtypeStruct((nb, 1, D), jnp.float32)),
        grid_spec=grid_spec,
        compiler_params=pltpu.CompilerParams(
            # No carried state across the batch axis -> fully parallel
            # (allows megacore split on v7x; harmless on single-TC parts).
            dimension_semantics=("parallel",),
            vmem_limit_bytes=vmem_limit),
        cost_estimate=cost,
    )


def sbgm_forward(x0, x1, t, params, sigma, reduction='mean',
                 block_b=None, stream_bf16=False):
    """Pallas-backed SBGM.forward (given pre-drawn noise x1 and times t)."""
    B, D = x0.shape
    H = params['w1'].shape[1]
    sigma = float(sigma)
    if sigma <= 0.0 or sigma == 1.0:
        raise ValueError("sigma must be positive and != 1 (log(sigma) is a denominator)")

    x_dtype = jnp.bfloat16 if stream_bf16 else jnp.float32
    x_itemsize = jnp.dtype(x_dtype).itemsize

    if block_b is None:
        cap = _tpu_vmem_capacity_bytes()
        weight_bytes = 2 * ((D * H + H * D) * 2 + (3 * D + H) * 4)
        per_row = 2 * 2 * D * x_itemsize + (D + H) * 16
        budget = max(0.0, 0.4 * cap - weight_bytes - 2 * B * 128 * 4)
        max_rows = max(8, int(budget // per_row))
        TB = _pick_block_b(B, max_rows)
    else:
        TB = int(block_b)
    if B % TB != 0:
        raise ValueError(f"block_b={TB} must divide batch={B}")

    hidden_bf16 = _hidden_tanh_bf16_supported()
    call = _build_sbgm_call(B, D, H, TB, sigma, hidden_bf16, x_itemsize)

    psig, pres = call(
        t.astype(jnp.float32),
        x0.astype(x_dtype), x1.astype(x_dtype),
        params['wte'].astype(jnp.float32),
        params['bte'].astype(jnp.float32),
        params['w1'].astype(jnp.bfloat16),      # MXU operands in bf16
        params['b1'].astype(jnp.float32),       # post-matmul adds stay f32
        params['w2'].astype(jnp.bfloat16),
        params['b2'].astype(jnp.float32))

    # Fold 0.5, the 1/D of mean(-1), and PyTorch's (B,1)*(B,)->(B,B) reduction
    # factor into one scalar; tiny cross-tile / cross-lane reduce in XLA.
    if reduction == 'sum':
        scale = 0.5 / D
    else:
        scale = 0.5 / (D * B * B)
    return jnp.float32(scale) * jnp.sum(psig) * jnp.sum(pres)


def init_params(key, D, H):
    """Deterministic synthetic parameters (time_embedding + 2-layer snet), f32."""
    ks = jax.random.split(key, 6)
    scale_te = 1.0                       # Linear(1, D): fan_in = 1
    scale_1 = 1.0 / math.sqrt(D)
    scale_2 = 1.0 / math.sqrt(H)
    return {
        # time_embedding: Linear(1, D) stored transposed as (1, D)
        'wte': jax.random.uniform(ks[0], (1, D), jnp.float32, -scale_te, scale_te),
        'bte': jax.random.uniform(ks[1], (1, D), jnp.float32, -scale_te, scale_te),
        # snet layer 1: Linear(D, H) stored as (D, H)
        'w1': jax.random.uniform(ks[2], (D, H), jnp.float32, -scale_1, scale_1),
        'b1': jax.random.uniform(ks[3], (1, H), jnp.float32, -scale_1, scale_1),
        # snet layer 2: Linear(H, D) stored as (H, D)
        'w2': jax.random.uniform(ks[4], (H, D), jnp.float32, -scale_2, scale_2),
        'b2': jax.random.uniform(ks[5], (1, D), jnp.float32, -scale_2, scale_2),
    }


def sbgm_forward_ref(x0, x1, t, params, sigma, reduction='mean',
                     matmul_dtype=jnp.float32, hidden_tanh_bf16=False):
    """Pure-JAX reference mirroring the PyTorch module.

    matmul_dtype=jnp.bfloat16 + hidden_tanh_bf16 mirrors the kernel precision;
    matmul_dtype=jnp.float32 mirrors the original f32 PyTorch semantics.
    """
    log_sigma = math.log(sigma)
    sig2_t = (1.0 / (2.0 * log_sigma)) * (jnp.exp(2.0 * t * log_sigma) - 1.0)
    sig_t = jnp.sqrt(sig2_t)
    x_t = x0 + sig_t * x1
    t_embd = jnp.tanh(t * params['wte'] + params['bte'])
    z = x_t + t_embd
    pre1 = jnp.dot(z.astype(matmul_dtype), params['w1'].astype(matmul_dtype),
                   preferred_element_type=jnp.float32) + params['b1']
    if hidden_tanh_bf16:
        h = jnp.tanh(pre1.astype(jnp.bfloat16))
    else:
        h = jnp.tanh(pre1)
    s = jnp.dot(h.astype(matmul_dtype), params['w2'].astype(matmul_dtype),
                preferred_element_type=jnp.float32) + params['b2']
    x_pred = -sig_t * s
    mse = jnp.mean((x_pred + x1) ** 2, axis=-1)     # (B,)
    SM = 0.5 * sig2_t * mse                         # (B,1)*(B,) -> (B,B), as in PyTorch
    return jnp.sum(SM) if reduction == 'sum' else jnp.mean(SM)


if __name__ == "__main__":
    # Small but lane-dense shapes: D, H multiples of 128.
    B, D, H = 128, 128, 256
    sigma = 25.0

    key = jax.random.PRNGKey(0)
    k_x0, k_x1, k_t, k_p = jax.random.split(key, 4)

    x0 = jax.random.normal(k_x0, (B, D), jnp.float32)
    x1 = jax.random.normal(k_x1, (B, D), jnp.float32)              # randn_like(x_0)
    t = jax.random.uniform(k_t, (B, 1), jnp.float32) * (1.0 - EPS) + EPS

    params = init_params(k_p, D, H)
    hidden_bf16 = _hidden_tanh_bf16_supported()

    # Default path (auto TB -> single grid step on this shape) for mean & sum,
    # plus one forced-tiled run (TB=32, 4 parallel grid steps) to exercise the
    # per-tile partial-output + wrapper-reduce path.  Kernel builds are cached.
    configs = [("mean", None), ("sum", None), ("mean", 32)]
    for reduction, block_b in configs:
        loss = jax.block_until_ready(
            sbgm_forward(x0, x1, t, params, sigma, reduction=reduction,
                         block_b=block_b))
        # Reference with matching bf16 MXU / hidden-tanh precision (tight check).
        ref_matched = jax.block_until_ready(
            sbgm_forward_ref(x0, x1, t, params, sigma, reduction,
                             matmul_dtype=jnp.bfloat16,
                             hidden_tanh_bf16=hidden_bf16))
        # Full-f32 reference mirroring PyTorch (loose check vs bf16 matmuls).
        ref_f32 = jax.block_until_ready(
            sbgm_forward_ref(x0, x1, t, params, sigma, reduction,
                             matmul_dtype=jnp.float32, hidden_tanh_bf16=False))
        np.testing.assert_allclose(np.asarray(loss), np.asarray(ref_matched),
                                   rtol=1e-2, atol=1e-6)
        np.testing.assert_allclose(np.asarray(loss), np.asarray(ref_f32),
                                   rtol=6e-2, atol=1e-3)

    print("KERNEL_OK")
</pallas_src>

<mosaic_0001>
module attributes {stable_mosaic.version = 11 : i64} {
  func.func @_sbgm_tile_kernel(%arg0: i32, %arg1: memref<128x1xf32, #tpu.memory_space<vmem>>, %arg2: memref<128x128xf32, #tpu.memory_space<vmem>>, %arg3: memref<128x128xf32, #tpu.memory_space<vmem>>, %arg4: memref<1x128xf32, #tpu.memory_space<vmem>>, %arg5: memref<1x128xf32, #tpu.memory_space<vmem>>, %arg6: memref<128x256xbf16, #tpu.memory_space<vmem>>, %arg7: memref<1x256xf32, #tpu.memory_space<vmem>>, %arg8: memref<256x128xbf16, #tpu.memory_space<vmem>>, %arg9: memref<1x128xf32, #tpu.memory_space<vmem>>, %arg10: memref<1x1x1xf32, #tpu.memory_space<vmem>>, %arg11: memref<1x1x128xf32, #tpu.memory_space<vmem>>) attributes {dimension_semantics = [#tpu.dimension_semantics<parallel>], iteration_bounds = array<i64: 1>, scalar_prefetch = 0 : i64, scratch_operands = 0 : i64, tpu.core_type = #tpu.core_type<tc>, window_params = [{pipeline_mode = #tpu.pipeline_mode<synchronous>, transform_indices = @transform_0, window_bounds = array<i64: 128, 1>}, {transform_indices = @transform_1, window_bounds = array<i64: 128, 128>}, {transform_indices = @transform_2, window_bounds = array<i64: 128, 128>}, {pipeline_mode = #tpu.pipeline_mode<synchronous>, transform_indices = @transform_3, window_bounds = array<i64: 1, 128>}, {pipeline_mode = #tpu.pipeline_mode<synchronous>, transform_indices = @transform_4, window_bounds = array<i64: 1, 128>}, {pipeline_mode = #tpu.pipeline_mode<synchronous>, transform_indices = @transform_5, window_bounds = array<i64: 128, 256>}, {pipeline_mode = #tpu.pipeline_mode<synchronous>, transform_indices = @transform_6, window_bounds = array<i64: 1, 256>}, {pipeline_mode = #tpu.pipeline_mode<synchronous>, transform_indices = @transform_7, window_bounds = array<i64: 256, 128>}, {pipeline_mode = #tpu.pipeline_mode<synchronous>, transform_indices = @transform_8, window_bounds = array<i64: 1, 128>}, {transform_indices = @transform_9, window_bounds = array<i64: 1, 1, 1>}, {transform_indices = @transform_10, window_bounds = array<i64: 1, 1, 128>}]} {
    %c128_i32 = arith.constant 128 : i32
    %0 = arith.muli %arg0, %c128_i32 : i32
    %1 = tpu.assume_multiple %0, 128 : i32
    %2 = arith.index_cast %1 : i32 to index
    %c0 = arith.constant 0 : index
    %3 = vector.load %arg1[%2, %c0] : memref<128x1xf32, #tpu.memory_space<vmem>>, vector<128x1xf32>
    %c0_0 = arith.constant 0 : index
    %c0_1 = arith.constant 0 : index
    %4 = vector.load %arg2[%c0_0, %c0_1] : memref<128x128xf32, #tpu.memory_space<vmem>>, vector<128x128xf32>
    %c0_2 = arith.constant 0 : index
    %c0_3 = arith.constant 0 : index
    %5 = vector.load %arg3[%c0_2, %c0_3] : memref<128x128xf32, #tpu.memory_space<vmem>>, vector<128x128xf32>
    %cst = arith.constant 2.000000e+00 : f32
    %cst_4 = arith.constant 3.21887589 : f32
    %6 = arith.mulf %cst, %cst_4 : f32
    %7 = vector.broadcast %6 : f32 to vector<128x1xf32>
    %8 = arith.mulf %7, %3 : vector<128x1xf32>
    %9 = math.exp %8 : vector<128x1xf32>
    %cst_5 = arith.constant 1.000000e+00 : f32
    %10 = vector.broadcast %cst_5 : f32 to vector<128x1xf32>
    %11 = arith.subf %9, %10 : vector<128x1xf32>
    %cst_6 = arith.constant 0.155333728 : f32
    %12 = vector.broadcast %cst_6 : f32 to vector<128x1xf32>
    %13 = arith.mulf %12, %11 : vector<128x1xf32>
    %14 = math.sqrt %13 : vector<128x1xf32>
    %15 = vector.broadcast %14 : vector<128x1xf32> to vector<128x128xf32>
    %16 = arith.mulf %15, %5 : vector<128x128xf32>
    %17 = arith.addf %4, %16 : vector<128x128xf32>
    %c0_7 = arith.constant 0 : index
    %c0_8 = arith.constant 0 : index
    %18 = vector.load %arg4[%c0_7, %c0_8] : memref<1x128xf32, #tpu.memory_space<vmem>>, vector<1x128xf32>
    %19 = vector.broadcast %3 : vector<128x1xf32> to vector<128x128xf32>
    %20 = vector.broadcast %18 : vector<1x128xf32> to vector<128x128xf32>
    %21 = arith.mulf %19, %20 : vector<128x128xf32>
    %c0_9 = arith.constant 0 : index
    %c0_10 = arith.constant 0 : index
    %22 = vector.load %arg5[%c0_9, %c0_10] : memref<1x128xf32, #tpu.memory_space<vmem>>, vector<1x128xf32>
    %23 = vector.broadcast %22 : vector<1x128xf32> to vector<128x128xf32>
    %24 = arith.addf %21, %23 : vector<128x128xf32>
    %25 = math.tanh %24 : vector<128x128xf32>
    %26 = arith.addf %17, %25 : vector<128x128xf32>
    %27 = arith.truncf %26 : vector<128x128xf32> to vector<128x128xbf16>
    %c0_11 = arith.constant 0 : index
    %c0_12 = arith.constant 0 : index
    %28 = vector.load %arg6[%c0_11, %c0_12] : memref<128x256xbf16, #tpu.memory_space<vmem>>, vector<128x256xbf16>
    %cst_13 = arith.constant dense<0.000000e+00> : vector<128x256xf32>
    %29 = tpu.matmul %27, %28, %cst_13 {dimension_numbers = #tpu.dot_dimension_numbers<[1], [0], [0], [1], [0, 0, 1, 1], [], []>} : vector<128x128xbf16>, vector<128x256xbf16>, vector<128x256xf32> -> vector<128x256xf32>
    %c0_14 = arith.constant 0 : index
    %c0_15 = arith.constant 0 : index
    %30 = vector.load %arg7[%c0_14, %c0_15] : memref<1x256xf32, #tpu.memory_space<vmem>>, vector<1x256xf32>
    %31 = vector.broadcast %30 : vector<1x256xf32> to vector<128x256xf32>
    %32 = arith.addf %29, %31 : vector<128x256xf32>
    %33 = math.tanh %32 : vector<128x256xf32>
    %34 = arith.truncf %33 : vector<128x256xf32> to vector<128x256xbf16>
    %c0_16 = arith.constant 0 : index
    %c0_17 = arith.constant 0 : index
    %35 = vector.load %arg8[%c0_16, %c0_17] : memref<256x128xbf16, #tpu.memory_space<vmem>>, vector<256x128xbf16>
    %cst_18 = arith.constant dense<0.000000e+00> : vector<128x128xf32>
    %36 = tpu.matmul %34, %35, %cst_18 {dimension_numbers = #tpu.dot_dimension_numbers<[1], [0], [0], [1], [0, 0, 1, 1], [], []>} : vector<128x256xbf16>, vector<256x128xbf16>, vector<128x128xf32> -> vector<128x128xf32>
    %c0_19 = arith.constant 0 : index
    %c0_20 = arith.constant 0 : index
    %37 = vector.load %arg9[%c0_19, %c0_20] : memref<1x128xf32, #tpu.memory_space<vmem>>, vector<1x128xf32>
    %38 = vector.broadcast %37 : vector<1x128xf32> to vector<128x128xf32>
    %39 = arith.addf %36, %38 : vector<128x128xf32>
    %40 = vector.broadcast %14 : vector<128x1xf32> to vector<128x128xf32>
    %41 = arith.mulf %40, %39 : vector<128x128xf32>
    %42 = arith.subf %5, %41 : vector<128x128xf32>
    %43 = arith.mulf %42, %42 : vector<128x128xf32>
    %cst_21 = arith.constant dense<0.000000e+00> : vector<128xf32>
    %44 = vector.multi_reduction <add>, %43, %cst_21 [0] : vector<128x128xf32> to vector<128xf32>
    %45 = vector.shape_cast %44 : vector<128xf32> to vector<1x1x128xf32>
    %c0_22 = arith.constant 0 : index
    %c0_23 = arith.constant 0 : index
    %c0_24 = arith.constant 0 : index
    %46 = vector.load %arg11[%c0_22, %c0_23, %c0_24] : memref<1x1x128xf32, #tpu.memory_space<vmem>>, vector<1x1x128xf32>
    tpu.vector_store %arg11[%c0_22, %c0_23, %c0_24], %45 {strides = array<i32>} : memref<1x1x128xf32, #tpu.memory_space<vmem>>, vector<1x1x128xf32>,
    %47 = vector.shape_cast %13 : vector<128x1xf32> to vector<1x128x1xf32>
    %cst_25 = arith.constant dense<0.000000e+00> : vector<1xf32>
    %48 = vector.multi_reduction <add>, %47, %cst_25 [1, 2] : vector<1x128x1xf32> to vector<1xf32>
    %49 = vector.shape_cast %48 : vector<1xf32> to vector<1x1x1xf32>
    %50 = vector.extract %49[0, 0, 0] : f32 from vector<1x1x1xf32>
    %51 = vector.broadcast %50 : f32 to vector<1x1x1xf32>
    %c0_26 = arith.constant 0 : index
    %c0_27 = arith.constant 0 : index
    %c0_28 = arith.constant 0 : index
    %52 = vector.load %arg10[%c0_26, %c0_27, %c0_28] : memref<1x1x1xf32, #tpu.memory_space<vmem>>, vector<1x1x1xf32>
    tpu.vector_store %arg10[%c0_26, %c0_27, %c0_28], %51 {strides = array<i32>} : memref<1x1x1xf32, #tpu.memory_space<vmem>>, vector<1x1x1xf32>,
    return
  }
  func.func @transform_0(%arg0: i32) -> (i32, i32) {
    %c0_i32 = arith.constant 0 : i32
    %c0_i32_0 = arith.constant 0 : i32
    %c0_i32_1 = arith.constant 0 : i32
    return %c0_i32, %c0_i32_0 : i32, i32
  }
  func.func @transform_1(%arg0: i32) -> (i32, i32) {
    %c0_i32 = arith.constant 0 : i32
    %c0_i32_0 = arith.constant 0 : i32
    return %arg0, %c0_i32 : i32, i32
  }
  func.func @transform_2(%arg0: i32) -> (i32, i32) {
    %c0_i32 = arith.constant 0 : i32
    %c0_i32_0 = arith.constant 0 : i32
    return %arg0, %c0_i32 : i32, i32
  }
  func.func @transform_3(%arg0: i32) -> (i32, i32) {
    %c0_i32 = arith.constant 0 : i32
    %c0_i32_0 = arith.constant 0 : i32
    %c0_i32_1 = arith.constant 0 : i32
    return %c0_i32, %c0_i32_0 : i32, i32
  }
  func.func @transform_4(%arg0: i32) -> (i32, i32) {
    %c0_i32 = arith.constant 0 : i32
    %c0_i32_0 = arith.constant 0 : i32
    %c0_i32_1 = arith.constant 0 : i32
    return %c0_i32, %c0_i32_0 : i32, i32
  }
  func.func @transform_5(%arg0: i32) -> (i32, i32) {
    %c0_i32 = arith.constant 0 : i32
    %c0_i32_0 = arith.constant 0 : i32
    %c0_i32_1 = arith.constant 0 : i32
    return %c0_i32, %c0_i32_0 : i32, i32
  }
  func.func @transform_6(%arg0: i32) -> (i32, i32) {
    %c0_i32 = arith.constant 0 : i32
    %c0_i32_0 = arith.constant 0 : i32
    %c0_i32_1 = arith.constant 0 : i32
    return %c0_i32, %c0_i32_0 : i32, i32
  }
  func.func @transform_7(%arg0: i32) -> (i32, i32) {
    %c0_i32 = arith.constant 0 : i32
    %c0_i32_0 = arith.constant 0 : i32
    %c0_i32_1 = arith.constant 0 : i32
    return %c0_i32, %c0_i32_0 : i32, i32
  }
  func.func @transform_8(%arg0: i32) -> (i32, i32) {
    %c0_i32 = arith.constant 0 : i32
    %c0_i32_0 = arith.constant 0 : i32
    %c0_i32_1 = arith.constant 0 : i32
    return %c0_i32, %c0_i32_0 : i32, i32
  }
  func.func @transform_9(%arg0: i32) -> (i32, i32, i32) {
    %c0_i32 = arith.constant 0 : i32
    %c0_i32_0 = arith.constant 0 : i32
    %c0_i32_1 = arith.constant 0 : i32
    return %arg0, %c0_i32, %c0_i32_0 : i32, i32, i32
  }
  func.func @transform_10(%arg0: i32) -> (i32, i32, i32) {
    %c0_i32 = arith.constant 0 : i32
    %c0_i32_0 = arith.constant 0 : i32
    %c0_i32_1 = arith.constant 0 : i32
    return %arg0, %c0_i32, %c0_i32_0 : i32, i32, i32
  }
}

</mosaic_0001>

<bundles_post_ra>
// kernel: tpu_custom_call.1
= control target key start
LH: loop header
LB: loop body
LE: loop exit
PB: predicated region body
PF: predicated region fallthrough
CT: control target
= control target key end

     0   :  { %16 = vsyncpa [#allocation3], 0  ;;  %s2320_s0 = inlined_call_operand.vmem [shape: f32[128,1], index: 0, kind: input, shape index: {}]   ;;  %s2321_s1 = inlined_call_operand.vmem [shape: f32[128,128], index: 1, kind: input, shape index: {}]   ;;  %s2322_s2 = inlined_call_operand.hbm [shape: f32[128,128], index: 2, kind: input, shape index: {}]   ;;  %s2323_s3 = inlined_call_operand.vmem [shape: f32[1,128], index: 3, kind: input, shape index: {}]   ;;  %s2324_s4 = inlined_call_operand.vmem [shape: f32[1,128], index: 4, kind: input, shape index: {}]   ;;  %s2325_s5 = inlined_call_operand.hbm [shape: bf16[128,256], index: 5, kind: input, shape index: {}]   ;;  %s2326_s6 = inlined_call_operand.vmem [shape: f32[1,256], index: 6, kind: input, shape index: {}]   ;;  %s2327_s7 = inlined_call_operand.hbm [shape: bf16[256,128], index: 7, kind: input, shape index: {}]   ;;  %s2328_s8 = inlined_call_operand.vmem [shape: f32[1,128], index: 8, kind: input, shape index: {}]   ;;  %s2329_s9 = inlined_call_operand.hbm [shape: f32[1,1,1], index: 9, kind: output, shape index: {0}]   ;;  %s2330_s10 = inlined_call_operand.hbm [shape: f32[1,1,128], index: 10, kind: output, shape index: {1}]  }
   0x1   :  { %17 = vsyncpa [#allocation6], 0 }
   0x2   :  { %18 = vsyncpa [#allocation4], 0 }
   0x3   :  { %19 = vsyncpa [#allocation10], 0  ;;  %s1680_s13 = smov [#allocation5]   ;;  %s1681_s15 = smov [#allocation2]  }
   0x4   :  { %s45_s14 = sshll.u32 %s1680_s13, 4  ;;  %s29_s16 = sshll.u32 %s1681_s15, 4  ;;  %s46_s14 = int_to_ptr.vmem [resolvable:$true] %s45_s14  ;;  %s30_s16 = int_to_ptr.vmem [resolvable:$true] %s29_s16 }
   0x5   :  { %s1580_s17 = scalar_lea.vmem %s46_s14, 2048  ;;  %p1585_p1 = scmp.lt.s32.totalorder %s46_s14, %s46_s14 }
   0x6   :  { %p1581_p0 = scmp.ne.s32.totalorder %s46_s14, %s1580_s17  ;;  %p1586_p2 = scmp.lt.s32.totalorder %s1580_s17, %s1580_s17 }
   0x8   :  { %p1587_p3 = por %p1586_p2, %p1585_p1 }
   0xa   :  { %p1588_p4 = pnand %p1587_p3, %p1581_p0 }
   0xc   :  { %1591 = shalt.err (!%p1588_p4)
}
   0xd   :  { %s1682_s18 = smov 128   ;;  %s1683_s19 = smov 8  }
   0xe   :  { %51 = dma.hbm_to_vmem [thread:$0]  %s2325_s5, 2048, %s46_s14, [#allocation6], %s1682_s18, %s1682_s18, %s1683_s19  }
   0xf   :  { %s1600_s22 = scalar_lea.vmem %s30_s16, 2048  ;;  %p1605_p6 = scmp.lt.s32.totalorder %s30_s16, %s30_s16 }
  0x10   :  { %p1601_p5 = scmp.ne.s32.totalorder %s30_s16, %s1600_s22  ;;  %p1606_p7 = scmp.lt.s32.totalorder %s1600_s22, %s1600_s22 }
  0x12   :  { %p1607_p8 = por %p1606_p7, %p1605_p6 }
  0x14   :  { %p1608_p9 = pnand %p1607_p8, %p1601_p5 }
  0x16   :  { %1611 = shalt.err (!%p1608_p9)
}
  0x17   :  { %35 = dma.hbm_to_vmem [thread:$0]  %s2322_s2, 2048, %s30_s16, [#allocation3], %s1682_s18, %s1682_s18, %s1683_s19  }
  0x18   :  { %s1684_s25 = smov [#allocation7]  }
  0x19   :  { %s59_s26 = sshll.u32 %s1684_s25, 4  ;;  %s60_s26 = int_to_ptr.vmem [resolvable:$true] %s59_s26 }
  0x1a   :  { %s1620_s27 = scalar_lea.vmem %s60_s26, 2048  ;;  %p1625_p11 = scmp.lt.s32.totalorder %s60_s26, %s60_s26 }
  0x1b   :  { %p1621_p10 = scmp.ne.s32.totalorder %s60_s26, %s1620_s27  ;;  %p1626_p12 = scmp.lt.s32.totalorder %s1620_s27, %s1620_s27 }
  0x1d   :  { %p1627_p13 = por %p1626_p12, %p1625_p11 }
  0x1f   :  { %p1628_p0 = pnand %p1627_p13, %p1621_p10 }
  0x21   :  { %1631 = shalt.err (!%p1628_p0)
}
  0x22   :  { %s1685_s5 = smov 64   ;;  %s1686_s28 = smov 4  }
  0x23   :  { %65 = dma.hbm_to_vmem [thread:$0]  %s2327_s7, 2048, %s60_s26, [#allocation6], %s1685_s5, %s1685_s5, %s1686_s28  }
  0x24   :  { %1672 = dma.done.wait [#allocation3], 2048  }
  0x25   :  { %1673 = vsyncadd [#allocation3], 4294965248 }
  0x26   :  { %1674 = dma.done.wait [#allocation6], 4096  }
  0x27   :  { %1675 = vsyncadd [#allocation6], 4294963200  ;;  %v1687_v0 = vmov 0   ;;  %v80_v1 = vld [vmem:[%s2320_s0] sm:$0xff]  ;;  %v81_v2 = vld [vmem:[%s2320_s0 + $0x8] sm:$0xff] }
  0x28   :  { %1370 = vset.pattern.permute.xlu0 %v1687_v0  ;;  %1371 = vset.pattern.permute.xlu1 %v1687_v0  ;;  %v82_v3 = vld [vmem:[%s2320_s0 + $0x10] sm:$0xff]  ;;  %v128_v4 = vmul.f32 6.437752, %v80_v1  ;;  %v129_v5 = vmul.f32 6.437752, %v81_v2  ;;  %v83_v7 = vld [vmem:[%s2320_s0 + $0x18] sm:$0xff] }
  0x29   :  { %738 = vmatprep.mubr.bf16.mxu0 %v1687_v0  ;;  %435 = vperm.xlu0 %1370, %v80_v1   ;;  %v130_v6 = vmul.f32 6.437752, %v82_v3  ;;  %v1772_v8 = vld [vmem:[%s2320_s0 + $0x28] sm:$0xff]  ;;  %v1777_v9 = vld [vmem:[%s2320_s0 + $0x20] sm:$0xff]  ;;  %v131_v13 = vmul.f32 6.437752, %v83_v7 }
  0x2a   :  { %445 = vperm.xlu1 %1371, %v82_v3   ;;  %v144_v10 = vmul.f32 1.442695, %v128_v4  ;;  %v146_v11 = vmul.f32 1.442695, %v129_v5  ;;  %v133_v14 = vmul.f32 6.437752, %v1772_v8 }
  0x2b   :  { %v148_v12 = vmul.f32 1.442695, %v130_v6  ;;  %v132_v15 = vmul.f32 6.437752, %v1777_v9  ;;  %v1784_v16 = vld [vmem:[%s2320_s0 + $0x38] sm:$0xff]  ;;  %v1789_v17 = vld [vmem:[%s2320_s0 + $0x30] sm:$0xff] }
  0x2c   :  { %1412 = vpow2.f32 %v144_v10  ;;  %v150_v18 = vmul.f32 1.442695, %v131_v13  ;;  %v154_v19 = vmul.f32 1.442695, %v133_v14  ;;  %v134_v21 = vmul.f32 6.437752, %v1789_v17 }
  0x2d   :  { %440 = vperm.xlu0 %1370, %v81_v2   ;;  %1414 = vpow2.f32 %v146_v11  ;;  %v152_v20 = vmul.f32 1.442695, %v132_v15  ;;  %v135_v22 = vmul.f32 6.437752, %v1784_v16  ;;  %v1796_v23 = vld [vmem:[%s2320_s0 + $0x48] sm:$0xff]  ;;  %v1801_v25 = vld [vmem:[%s2320_s0 + $0x40] sm:$0xff] }
  0x2e   :  { %450 = vperm.xlu1 %1371, %v83_v7   ;;  %1416 = vpow2.f32 %v148_v12  ;;  %v156_v24 = vmul.f32 1.442695, %v134_v21  ;;  %v137_v27 = vmul.f32 6.437752, %v1796_v23  ;;  %v136_v28 = vmul.f32 6.437752, %v1801_v25 }
  0x2f   :  { %1418 = vpow2.f32 %v150_v18  ;;  %v158_v26 = vmul.f32 1.442695, %v135_v22  ;;  %v1808_v29 = vld [vmem:[%s2320_s0 + $0x58] sm:$0xff]  ;;  %v1813_v33 = vld [vmem:[%s2320_s0 + $0x50] sm:$0xff]  ;;  %v1375_v36 = vld [vmem:[#allocation5 + $0x64] ss:$8 sps:$4 sm:$0xff]  }
  0x30   :  { %1420 = vpow2.f32 %v154_v19  ;;  %v1372_v30 = vld [vmem:[#allocation5 + $0x74] ss:$8 sps:$4 sm:$0xff]   ;;  %v1374_v31 = vld [vmem:[#allocation5 + $0x70] ss:$8 sps:$4 sm:$0xff]   ;;  %v162_v32 = vmul.f32 1.442695, %v137_v27 }
  0x31   :  { %1422 = vpow2.f32 %v152_v20  ;;  %v160_v35 = vmul.f32 1.442695, %v136_v28  ;;  %706 = vmatprep.subr.bf16.mxu0 %v1372_v30  ;;  %v139_v39 = vmul.f32 6.437752, %v1808_v29  ;;  %v1377_v40 = vld [vmem:[#allocation5 + $0x60] ss:$8 sps:$4 sm:$0xff]  }
  0x32   :  { %1424 = vpow2.f32 %v156_v24  ;;  %707 = vmatpush1.bf16.msra.mxu0 %v1374_v31  ;;  %v1378_v43 = vld [vmem:[#allocation5 + $0x54] ss:$8 sps:$4 sm:$0xff]   ;;  %v138_v47 = vmul.f32 6.437752, %v1813_v33  ;;  %v1824_v51 = vld [vmem:[%s2320_s0 + $0x68] sm:$0xff]  ;;  %v1832_v54 = vld [vmem:[%s2320_s0 + $0x60] sm:$0xff] }
  0x33   :  { %1426 = vpow2.f32 %v158_v26  ;;  %708 = vmatprep.subr.bf16.mxu0 %v1375_v36  ;;  %v1837_v55 = vld [vmem:[%s2320_s0 + $0x78] sm:$0xff]  ;;  %v166_v58 = vmul.f32 1.442695, %v139_v39  ;;  %v1381_v59 = vld [vmem:[#allocation5 + $0x44] ss:$8 sps:$4 sm:$0xff]   ;;  %v1851_v3 = vld [vmem:[%s2320_s0 + $0x70] sm:$0xff] }
  0x34   :  { %1428 = vpow2.f32 %v162_v32  ;;  %v1380_v56 = vld [vmem:[#allocation5 + $0x50] ss:$8 sps:$4 sm:$0xff]   ;;  %v141_v62 = vmul.f32 6.437752, %v1824_v51  ;;  %v164_v63 = vmul.f32 1.442695, %v138_v47 }
  0x35   :  { %1430 = vpow2.f32 %v160_v35  ;;  %v140_v1 = vmul.f32 6.437752, %v1832_v54  ;;  %v1383_v4 = vld [vmem:[#allocation5 + $0x40] ss:$8 sps:$4 sm:$0xff]   ;;  %v143_v7 = vmul.f32 6.437752, %v1837_v55 }
  0x36   :  { %709 = vmatpush1.bf16.msra.mxu0 %v1377_v40  ;;  %v1384_v10 = vld [vmem:[#allocation5 + $0x34] ss:$8 sps:$4 sm:$0xff]   ;;  %v170_v12 = vmul.f32 1.442695, %v141_v62  ;;  %v142_v14 = vmul.f32 6.437752, %v1851_v3 }
  0x37   :  { %710 = vmatprep.subr.bf16.mxu0 %v1378_v43  ;;  %v168_v13 = vmul.f32 1.442695, %v140_v1  ;;  %v1386_v18 = vld [vmem:[#allocation5 + $0x30] ss:$8 sps:$4 sm:$0xff]   ;;  %v1387_v20 = vld [vmem:[#allocation5 + $0x24] ss:$8 sps:$4 sm:$0xff]  }
  0x38   :  { %v174_v22 = vmul.f32 1.442695, %v143_v7  ;;  %v1389_v27 = vld [vmem:[#allocation5 + $0x20] ss:$8 sps:$4 sm:$0xff]   ;;  %v172_v32 = vmul.f32 1.442695, %v142_v14 }
  0x39   :  { %v1413_v34 = vpop.eup %1412  ;;  %v1392_v43 = vld [vmem:[#allocation5 + $0x10] ss:$8 sps:$4 sm:$0xff]   ;;  %v1395_v1 = vld [vmem:[#allocation5] ss:$8 sps:$4 sm:$0xff]  }
  0x3a   :  { %v1415_v37 = vpop.eup %1414  ;;  %v1243_v38 = vadd.f32 -1.0, %v1413_v34  ;;  %711 = vmatpush1.bf16.msra.mxu0 %v1380_v56 }
  0x3b   :  { %v1417_v41 = vpop.eup %1416  ;;  %v1244_v42 = vadd.f32 -1.0, %v1415_v37  ;;  %712 = vmatprep.subr.bf16.mxu0 %v1381_v59  ;;  %v1390_v37 = vld [vmem:[#allocation5 + $0x14] ss:$8 sps:$4 sm:$0xff]  }
  0x3c   :  { %v1419_v44 = vpop.eup %1418  ;;  %v1816_v45 = vmul.f32 0.15533373, %v1243_v38  ;;  %v1245_v46 = vadd.f32 -1.0, %v1417_v41 }
  0x3d   :  { %v1421_v48 = vpop.eup %1420  ;;  %v1819_v49 = vmul.f32 0.15533373, %v1244_v42  ;;  %v1246_v50 = vadd.f32 -1.0, %v1419_v44 }
  0x3e   :  { %v1423_v52 = vpop.eup %1422  ;;  %v1826_v53 = vmul.f32 0.15533373, %v1245_v46  ;;  %1432 = vrsqrt.f32 %v1816_v45  ;;  %v1248_v60 = vadd.f32 -1.0, %v1421_v48  ;;  %713 = vmatpush1.bf16.msra.mxu0 %v1383_v4  ;;  %vm210_vm0 = vcmp.eq.f32.partialorder %v1816_v45, inf }
  0x3f   :  { %v1839_v57 = vmul.f32 0.15533373, %v1246_v50  ;;  %1434 = vrsqrt.f32 %v1819_v49  ;;  %v1247_v61 = vadd.f32 -1.0, %v1423_v52  ;;  %v1425_v5 = vpop.eup %1424  ;;  %714 = vmatprep.subr.bf16.mxu0 %v1384_v10  ;;  %v213_v30 = vand.u32 2147483648, %v1816_v45  ;;  %v1393_v50 = vld [vmem:[#allocation5 + $0x4] ss:$8 sps:$4 sm:$0xff]  }
  0x40   :  { %v1853_v6 = vmul.f32 0.15533373, %v1248_v60  ;;  %v1427_v11 = vpop.eup %1426  ;;  %v1249_v15 = vadd.f32 -1.0, %v1425_v5  ;;  %vm217_vm1 = vcmp.eq.f32.partialorder %v1819_v49, inf  ;;  %v220_v35 = vand.u32 2147483648, %v1819_v49 }
  0x41   :  { %1436 = vrsqrt.f32 %v1839_v57  ;;  %v1845_v2 = vmul.f32 0.15533373, %v1247_v61  ;;  %v1250_v19 = vadd.f32 -1.0, %v1427_v11  ;;  %v1429_v21 = vpop.eup %1428  ;;  %vm212_vm2 = vcmp.eq.f32.partialorder %v1816_v45, 0.0 }
  0x42   :  { %1438 = vrsqrt.f32 %v1826_v53  ;;  %v1431_v24 = vpop.eup %1430  ;;  %v1859_v26 = vmul.f32 0.15533373, %v1249_v15  ;;  %715 = vmatpush1.bf16.msra.mxu0 %v1386_v18  ;;  %vm219_vm3 = vcmp.eq.f32.partialorder %v1819_v49, 0.0  ;;  %vm231_vm4 = vcmp.eq.f32.partialorder %v1839_v57, inf }
  0x43   :  { %1440 = vpow2.f32 %v166_v58  ;;  %v1863_v31 = vmul.f32 0.15533373, %v1250_v19  ;;  %716 = vmatprep.subr.bf16.mxu0 %v1387_v20  ;;  %v1251_v39 = vadd.f32 -1.0, %v1431_v24  ;;  %vm224_vm5 = vcmp.eq.f32.partialorder %v1826_v53, inf }
  0x44   :  { %1442 = vpow2.f32 %v164_v63  ;;  %v1252_v42 = vadd.f32 -1.0, %v1429_v21  ;;  %vm233_vm6 = vcmp.eq.f32.partialorder %v1839_v57, 0.0  ;;  %v234_v56 = vand.u32 2147483648, %v1839_v57 }
  0x45   :  { %1444 = vrsqrt.f32 %v1845_v2  ;;  %vm226_vm7 = vcmp.eq.f32.partialorder %v1826_v53, 0.0  ;;  %v227_v60 = vand.u32 2147483648, %v1826_v53  ;;  %v1889_v61 = vmul.f32 0.15533373, %v1251_v39 }
  0x46   :  { %1446 = vrsqrt.f32 %v1853_v6  ;;  %717 = vmatpush1.bf16.msra.mxu0 %v1389_v27  ;;  %v1897_v7 = vmul.f32 0.15533373, %v1252_v42  ;;  %vm245_vm8 = vcmp.eq.f32.partialorder %v1853_v6, inf  ;;  %vm238_vm9 = vcmp.eq.f32.partialorder %v1845_v2, inf }
  0x47   :  { %1448 = vpow2.f32 %v170_v12  ;;  %718 = vmatprep.subr.bf16.mxu0 %v1390_v37  ;;  %vm247_vm10 = vcmp.eq.f32.partialorder %v1853_v6, 0.0  ;;  %v248_v19 = vand.u32 2147483648, %v1853_v6  ;;  %vm240_vm11 = vcmp.eq.f32.partialorder %v1845_v2, 0.0 }
  0x48   :  { %1450 = vpow2.f32 %v168_v13  ;;  %v241_v20 = vand.u32 2147483648, %v1845_v2  ;;  %vm252_vm12 = vcmp.eq.f32.partialorder %v1859_v26, inf  ;;  %vm259_vm13 = vcmp.eq.f32.partialorder %v1863_v31, inf }
  0x49   :  { %1452 = vrsqrt.f32 %v1859_v26  ;;  %vm254_vm14 = vcmp.eq.f32.partialorder %v1859_v26, 0.0  ;;  %vm261_vm15 = vcmp.eq.f32.partialorder %v1863_v31, 0.0 }
  0x4a   :  { %1454 = vrsqrt.f32 %v1863_v31  ;;  %719 = vmatpush1.bf16.msra.mxu0 %v1392_v43 }
  0x4b   :  { %v1433_v28 = vpop.eup %1432  ;;  %1456 = vpow2.f32 %v172_v32  ;;  %720 = vmatprep.subr.bf16.mxu0 %v1393_v50 }
  0x4c   :  { %v1435_v34 = vpop.eup %1434  ;;  %v209_v36 = vmul.f32 %v1433_v28, %v1816_v45  ;;  %1458 = vpow2.f32 %v174_v22 }
  0x4d   :  { %v216_v38 = vmul.f32 %v1435_v34, %v1819_v49  ;;  %1460 = vrsqrt.f32 %v1889_v61 }
  0x4e   :  { %v1437_v40 = vpop.eup %1436  ;;  %v211_v41 = vsel %vm210_vm0, %v1816_v45, %v209_v36  ;;  %721 = vmatpush1.bf16.msra.mxu0 %v1395_v1  ;;  %1462 = vrsqrt.f32 %v1897_v7  ;;  %vm266_vm0 = vcmp.eq.f32.partialorder %v1889_v61, inf }
  0x4f   :  { %v1439_v44 = vpop.eup %1438  ;;  %v218_v46 = vsel %vm217_vm1, %v1819_v49, %v216_v38  ;;  %v214_v47 = vsel %vm212_vm2, %v213_v30, %v211_v41  ;;  %v230_v48 = vmul.f32 %v1437_v40, %v1839_v57  ;;  %vm273_vm1 = vcmp.eq.f32.partialorder %v1897_v7, inf }
  0x50   :  { %v221_v52 = vsel %vm219_vm3, %v220_v35, %v218_v46  ;;  %322 = vperm.xlu0 %1370, %v214_v47   ;;  %v223_v58 = vmul.f32 %v1439_v44, %v1826_v53  ;;  %v1441_v59 = vpop.eup %1440  ;;  %vm268_vm2 = vcmp.eq.f32.partialorder %v1889_v61, 0.0  ;;  %vm275_vm3 = vcmp.eq.f32.partialorder %v1897_v7, 0.0 }
  0x51   :  { %327 = vperm.xlu1 %1371, %v221_v52   ;;  %v1443_v62 = vpop.eup %1442  ;;  %v232_v5 = vsel %vm231_vm4, %v1839_v57, %v230_v48 }
  0x52   :  { %v225_v63 = vsel %vm224_vm5, %v1826_v53, %v223_v58  ;;  %v1445_v4 = vpop.eup %1444  ;;  %v235_v13 = vsel %vm233_vm6, %v234_v56, %v232_v5  ;;  %v1253_v15 = vadd.f32 -1.0, %v1443_v62 }
  0x53   :  { %v1447_v10 = vpop.eup %1446  ;;  %v228_v11 = vsel %vm226_vm7, %v227_v60, %v225_v63  ;;  %v237_v14 = vmul.f32 %v1445_v4, %v1845_v2 }
  0x54   :  { %455 = vperm.xlu0 %1370, %v1777_v9   ;;  %v1449_v12 = vpop.eup %1448  ;;  %v244_v9 = vmul.f32 %v1447_v10, %v1853_v6  ;;  %v1916_v22 = vmul.f32 0.15533373, %v1253_v15 }
  0x55   :  { %460 = vperm.xlu1 %1371, %v1772_v8   ;;  %v1451_v18 = vpop.eup %1450  ;;  %v1254_v8 = vadd.f32 -1.0, %v1441_v59  ;;  %v239_v21 = vsel %vm238_vm9, %v1845_v2, %v237_v14  ;;  %v1256_v39 = vadd.f32 -1.0, %v1449_v12 }
  0x56   :  { %v1453_v24 = vpop.eup %1452  ;;  %v246_v27 = vsel %vm245_vm8, %v1853_v6, %v244_v9  ;;  %v242_v32 = vsel %vm240_vm11, %v241_v20, %v239_v21  ;;  %v1255_v36 = vadd.f32 -1.0, %v1451_v18  ;;  %1464 = vrsqrt.f32 %v1916_v22 }
  0x57   :  { %v1921_v28 = vmul.f32 0.15533373, %v1254_v8  ;;  %v1455_v30 = vpop.eup %1454  ;;  %v249_v34 = vsel %vm247_vm10, %v248_v19, %v246_v27  ;;  %v251_v35 = vmul.f32 %v1453_v24, %v1859_v26  ;;  %v1939_v47 = vmul.f32 0.15533373, %v1256_v39 }
  0x58   :  { %332 = vperm.xlu0 %1370, %v228_v11   ;;  %v1457_v37 = vpop.eup %1456  ;;  %v258_v38 = vmul.f32 %v1455_v30, %v1863_v31  ;;  %v1935_v42 = vmul.f32 0.15533373, %v1255_v36  ;;  %vm280_vm4 = vcmp.eq.f32.partialorder %v1916_v22, inf  ;;  %v283_v14 = vand.u32 2147483648, %v1916_v22 }
  0x59   :  { %337 = vperm.xlu1 %1371, %v235_v13   ;;  %1466 = vrsqrt.f32 %v1921_v28  ;;  %v1459_v40 = vpop.eup %1458  ;;  %v253_v41 = vsel %vm252_vm12, %v1859_v26, %v251_v35  ;;  %v1257_v43 = vadd.f32 -1.0, %v1457_v37  ;;  %vm287_vm5 = vcmp.eq.f32.partialorder %v1921_v28, inf }
  0x5a   :  { %v1461_v44 = vpop.eup %1460  ;;  %v260_v46 = vsel %vm259_vm13, %v1863_v31, %v258_v38  ;;  %v1258_v48 = vadd.f32 -1.0, %v1459_v40  ;;  %1468 = vrsqrt.f32 %v1935_v42  ;;  %v290_v15 = vand.u32 2147483648, %v1921_v28 }
  0x5b   :  { %v1463_v50 = vpop.eup %1462  ;;  %v265_v58 = vmul.f32 %v1461_v44, %v1889_v61  ;;  %v1944_v59 = vmul.f32 0.15533373, %v1257_v43  ;;  %1470 = vrsqrt.f32 %v1939_v47  ;;  %vm282_vm6 = vcmp.eq.f32.partialorder %v1916_v22, 0.0  ;;  %v1398_v43 = vld [vmem:[#allocation7 + $0x70] sm:$0xff]  }
  0x5c   :  { %465 = vperm.xlu0 %1370, %v1789_v17   ;;  %v255_v17 = vand.u32 2147483648, %v1859_v26  ;;  %v272_v60 = vmul.f32 %v1463_v50, %v1897_v7  ;;  %v1949_v62 = vmul.f32 0.15533373, %v1258_v48  ;;  %vm289_vm7 = vcmp.eq.f32.partialorder %v1921_v28, 0.0  ;;  %v1399_v44 = vld [vmem:[#allocation7 + $0x30] sm:$0xff]  }
  0x5d   :  { %470 = vperm.xlu1 %1371, %v1784_v16   ;;  %v262_v16 = vand.u32 2147483648, %v1863_v31  ;;  %v267_v63 = vsel %vm266_vm0, %v1889_v61, %v265_v58  ;;  %1472 = vrsqrt.f32 %v1944_v59  ;;  %vm294_vm8 = vcmp.eq.f32.partialorder %v1935_v42, inf  ;;  %v2000_v48 = vld [vmem:[%s2323_s3] ss:$0 sm:$0xff] }
  0x5e   :  { %v256_v52 = vsel %vm254_vm14, %v255_v17, %v253_v41  ;;  %v274_v4 = vsel %vm273_vm1, %v1897_v7, %v272_v60  ;;  %1474 = vrsqrt.f32 %v1949_v62  ;;  %vm301_vm9 = vcmp.eq.f32.partialorder %v1939_v47, inf  ;;  %v1397_v41 = vld [vmem:[#allocation7 + $0x38] sm:$0xff]   ;;  %v2006_v58 = vld [vmem:[%s2324_s4] ss:$0 sm:$0xff] }
  0x5f   :  { %v263_v56 = vsel %vm261_vm15, %v262_v16, %v260_v46  ;;  %v297_v30 = vand.u32 2147483648, %v1935_v42  ;;  %vm296_vm10 = vcmp.eq.f32.partialorder %v1935_v42, 0.0  ;;  %vm303_vm11 = vcmp.eq.f32.partialorder %v1939_v47, 0.0 }
  0x60   :  { %342 = vperm.xlu0 %1370, %v242_v32   ;;  %vm308_vm12 = vcmp.eq.f32.partialorder %v1944_v59, inf  ;;  %vm315_vm13 = vcmp.eq.f32.partialorder %v1949_v62, inf  ;;  %v311_v37 = vand.u32 2147483648, %v1944_v59  ;;  %v318_v39 = vand.u32 2147483648, %v1949_v62 }
  0x61   :  { %347 = vperm.xlu1 %1371, %v249_v34   ;;  %vm310_vm14 = vcmp.eq.f32.partialorder %v1944_v59, 0.0  ;;  %vm317_vm15 = vcmp.eq.f32.partialorder %v1949_v62, 0.0  ;;  %vm1169_vm0 = vcmask 7168   ;;  %vm1211_vm1 = vcmask 0  }
  0x63   :  { %v1465_v1 = vpop.eup %1464 }
  0x64   :  { %475 = vperm.xlu0 %1370, %v1801_v25   ;;  %v276_v25 = vand.u32 2147483648, %v1897_v7  ;;  %v279_v12 = vmul.f32 %v1465_v1, %v1916_v22 }
  0x65   :  { %480 = vperm.xlu1 %1371, %v1796_v23   ;;  %v269_v23 = vand.u32 2147483648, %v1889_v61 }
  0x66   :  { %v1467_v5 = vpop.eup %1466  ;;  %v277_v11 = vsel %vm275_vm3, %v276_v25, %v274_v4 }
  0x67   :  { %v270_v10 = vsel %vm268_vm2, %v269_v23, %v267_v63  ;;  %v286_v13 = vmul.f32 %v1467_v5, %v1921_v28 }
  0x68   :  { %352 = vperm.xlu0 %1370, %v256_v52  }
  0x69   :  { %357 = vperm.xlu1 %1371, %v263_v56   ;;  %v288_v18 = vsel %vm287_vm5, %v1921_v28, %v286_v13  ;;  %v96_v13 = vld [vmem:[%s2321_s1] sm:$0xff] }
  0x6a   :  { %v291_v19 = vsel %vm289_vm7, %v290_v15, %v288_v18  ;;  %v97_v15 = vld [vmem:[%s2321_s1 + $0x8] sm:$0xff] }
  0x6c   :  { %485 = vperm.xlu0 %1370, %v1813_v33   ;;  %v281_v33 = vsel %vm280_vm4, %v1916_v22, %v279_v12  ;;  %v2017_v12 = vld [vmem:[#allocation2 + $0x8] sm:$0xff] }
  0x6d   :  { %490 = vperm.xlu1 %1371, %v1808_v29   ;;  %v1469_v29 = vpop.eup %1468  ;;  %v284_v8 = vsel %vm282_vm6, %v283_v14, %v281_v33 }
  0x6e   :  { %v1471_v9 = vpop.eup %1470  ;;  %v293_v20 = vmul.f32 %v1469_v29, %v1935_v42 }
  0x6f   :  { %v1473_v21 = vpop.eup %1472  ;;  %v300_v24 = vmul.f32 %v1471_v9, %v1939_v47 }
  0x70   :  { %362 = vperm.xlu0 %1370, %v270_v10   ;;  %v1475_v27 = vpop.eup %1474  ;;  %v307_v32 = vmul.f32 %v1473_v21, %v1944_v59 }
  0x71   :  { %367 = vperm.xlu1 %1371, %v277_v11   ;;  %v302_v34 = vsel %vm301_vm9, %v1939_v47, %v300_v24  ;;  %v314_v35 = vmul.f32 %v1475_v27, %v1949_v62  ;;  %v2015_v11 = vld [vmem:[#allocation2] sm:$0xff] }
  0x72   :  { %v309_v40 = vsel %vm308_vm12, %v1944_v59, %v307_v32  ;;  %v2035_v32 = vld [vmem:[#allocation2 + $0x10] sm:$0xff] }
  0x73   :  { %v316_v16 = vsel %vm315_vm13, %v1949_v62, %v314_v35  ;;  %v2038_v35 = vld [vmem:[#allocation2 + $0x18] sm:$0xff] }
  0x74   :  { %495 = vperm.xlu0 %1370, %v1832_v54   ;;  %v304_v54 = vand.u32 2147483648, %v1939_v47  ;;  %v319_v17 = vsel %vm317_vm15, %v318_v39, %v316_v16 }
  0x75   :  { %500 = vperm.xlu1 %1371, %v1824_v51   ;;  %v295_v51 = vsel %vm294_vm8, %v1935_v42, %v293_v20 }
  0x76   :  { %v298_v36 = vsel %vm296_vm10, %v297_v30, %v295_v51  ;;  %v305_v38 = vsel %vm303_vm11, %v304_v54, %v302_v34 }
  0x78   :  { %372 = vperm.xlu0 %1370, %v284_v8  }
  0x79   :  { %377 = vperm.xlu1 %1371, %v291_v19  }
  0x7c   :  { %505 = vperm.xlu0 %1370, %v1851_v3   ;;  %v312_v3 = vsel %vm310_vm14, %v311_v37, %v309_v40  ;;  %v98_v37 = vld [vmem:[%s2321_s1 + $0x10] sm:$0xff]  ;;  %v99_v40 = vld [vmem:[%s2321_s1 + $0x18] sm:$0xff] }
  0x7d   :  { %510 = vperm.xlu1 %1371, %v1837_v55   ;;  %v1396_v55 = vld [vmem:[#allocation7 + $0x78] sm:$0xff]  }
  0x7e   :  { %1294 = vmatprep.subr.bf16.mxu1 %v1396_v55 }
  0x7f   :  { %1295 = vmatpush3.bf16.msra.mxu1 %v1397_v41 }
  0x80   :  { %382 = vperm.xlu0 %1370, %v298_v36   ;;  %1296 = vmatprep.subr.bf16.mxu1 %v1398_v43 }
  0x81   :  { %387 = vperm.xlu1 %1371, %v305_v38  }
  0x83   :  { %1297 = vmatpush3.bf16.msra.mxu1 %v1399_v44 }
  0x84   :  { %392 = vperm.xlu0 %1370, %v312_v3  }
  0x85   :  { %397 = vperm.xlu1 %1371, %v319_v17  }
  0xa4   :  { %v436_v46 = vpop.permute.xlu0 %435 }
  0xa5   :  { %v519_v52 = vmul.f32 %v2000_v48, %v436_v46  ;;  %v446_v56 = vpop.permute.xlu1 %445 }
  0xa6   :  { %v521_v1 = vmul.f32 %v2000_v48, %v446_v56 }
  0xa7   :  { %v542_v23 = vadd.f32 %v2006_v58, %v519_v52 }
  0xa8   :  { %v441_v50 = vpop.permute.xlu0 %440  ;;  %v544_v5 = vadd.f32 %v2006_v58, %v521_v1  ;;  %v2061_v1 = vld [vmem:[#allocation2 + $0x28] sm:$0xff] }
  0xa9   :  { %v520_v60 = vmul.f32 %v2000_v48, %v441_v50  ;;  %v451_v63 = vpop.permute.xlu1 %450  ;;  %1476 = vtanh.f32 %v542_v23 }
  0xaa   :  { %v522_v4 = vmul.f32 %v2000_v48, %v451_v63 }
  0xab   :  { %v543_v25 = vadd.f32 %v2006_v58, %v520_v60 }
  0xac   :  { %v545_v10 = vadd.f32 %v2006_v58, %v522_v4 }
  0xad   :  { %1478 = vtanh.f32 %v543_v25  ;;  %v2058_v25 = vld [vmem:[#allocation2 + $0x20] sm:$0xff] }
  0xae   :  { %1480 = vtanh.f32 %v544_v5 }
  0xaf   :  { %1482 = vtanh.f32 %v545_v10 }
  0xb6   :  { %v1477_v8 = vpop.eup %1476 }
  0xba   :  { %v1479_v21 = vpop.eup %1478 }
  0xbb   :  { %v1481_v41 = vpop.eup %1480 }
  0xbc   :  { %v1483_v46 = vpop.eup %1482 }
  0xcb   :  { %v2022_v14 = vpop.permute.xlu0 %322 }
  0xcc   :  { %v2027_v33 = vpop.permute.xlu1 %327  ;;  %v400_v29 = vmul.f32 %v2022_v14, %v2015_v11 }
  0xcd   :  { %v401_v18 = vmul.f32 %v2027_v33, %v2017_v12 }
  0xce   :  { %v416_v9 = vadd.f32 %v400_v29, %v96_v13 }
  0xcf   :  { %v417_v19 = vadd.f32 %v401_v18, %v97_v15  ;;  %v456_v20 = vpop.permute.xlu0 %455  ;;  %v100_v18 = vld [vmem:[%s2321_s1 + $0x20] sm:$0xff] }
  0xd0   :  { %v574_v24 = vadd.f32 %v1477_v8, %v416_v9  ;;  %v461_v27 = vpop.permute.xlu1 %460  ;;  %v523_v30 = vmul.f32 %v2000_v48, %v456_v20  ;;  %v101_v9 = vld [vmem:[%s2321_s1 + $0x28] sm:$0xff] }
  0xd1   :  { %v575_v54 = vadd.f32 %v1479_v21, %v417_v19  ;;  %v524_v51 = vmul.f32 %v2000_v48, %v461_v27 }
  0xd2   :  { %v546_v34 = vadd.f32 %v2006_v58, %v523_v30 }
  0xd3   :  { %v547_v36 = vadd.f32 %v2006_v58, %v524_v51  ;;  %v2044_v38 = vpop.permute.xlu0 %332  ;;  %v590_v39 = vpack.c.bf16 %v575_v54, %v574_v24  ;;  %v2081_v54 = vld [vmem:[#allocation2 + $0x30] sm:$0xff] }
  0xd4   :  { %1484 = vtanh.f32 %v546_v34  ;;  %v2049_v16 = vpop.permute.xlu1 %337  ;;  %v402_v3 = vmul.f32 %v2044_v38, %v2035_v32 }
  0xd5   :  { %1486 = vtanh.f32 %v547_v36  ;;  %v403_v17 = vmul.f32 %v2049_v16, %v2038_v35  ;;  %739 = vmatmul.mubr.bf16.vlgmr.msra.gmra.mxu0 %v590_v39 }
  0xd6   :  { %v418_v55 = vadd.f32 %v402_v3, %v98_v37  ;;  %748 = vmatprep.mubr.bf16.mxu0 %v1687_v0  ;;  %v2084_v37 = vld [vmem:[#allocation2 + $0x38] sm:$0xff] }
  0xd7   :  { %v419_v43 = vadd.f32 %v403_v17, %v99_v40  ;;  %v466_v44 = vpop.permute.xlu0 %465 }
  0xd8   :  { %v576_v50 = vadd.f32 %v1481_v41, %v418_v55  ;;  %v471_v52 = vpop.permute.xlu1 %470  ;;  %v525_v56 = vmul.f32 %v2000_v48, %v466_v44 }
  0xd9   :  { %v577_v60 = vadd.f32 %v1483_v46, %v419_v43  ;;  %v526_v23 = vmul.f32 %v2000_v48, %v471_v52  ;;  %v102_v43 = vld [vmem:[%s2321_s1 + $0x30] sm:$0xff]  ;;  %v103_v46 = vld [vmem:[%s2321_s1 + $0x38] sm:$0xff] }
  0xda   :  { %v548_v63 = vadd.f32 %v2006_v58, %v525_v56 }
  0xdb   :  { %v549_v4 = vadd.f32 %v2006_v58, %v526_v23  ;;  %v2064_v5 = vpop.permute.xlu0 %342  ;;  %v591_v10 = vpack.c.bf16 %v577_v60, %v576_v50 }
  0xdc   :  { %1488 = vtanh.f32 %v548_v63  ;;  %v2066_v13 = vpop.permute.xlu1 %347  ;;  %v404_v15 = vmul.f32 %v2064_v5, %v2058_v25 }
  0xdd   :  { %1490 = vtanh.f32 %v549_v4  ;;  %v405_v29 = vmul.f32 %v2066_v13, %v2061_v1  ;;  %749 = vmatmul.mubr.bf16.gmra.mxu0 %v591_v10  ;;  %v2104_v10 = vld [vmem:[#allocation2 + $0x40] sm:$0xff] }
  0xde   :  { %758 = vmatprep.mubr.bf16.mxu0 %v1687_v0  ;;  %v420_v19 = vadd.f32 %v404_v15, %v100_v18 }
  0xdf   :  { %v476_v8 = vpop.permute.xlu0 %475  ;;  %v421_v27 = vadd.f32 %v405_v29, %v101_v9  ;;  %v2107_v9 = vld [vmem:[#allocation2 + $0x48] sm:$0xff] }
  0xe0   :  { %v481_v20 = vpop.permute.xlu1 %480  ;;  %v527_v21 = vmul.f32 %v2000_v48, %v476_v8 }
  0xe1   :  { %v1485_v24 = vpop.eup %1484  ;;  %v528_v30 = vmul.f32 %v2000_v48, %v481_v20 }
  0xe2   :  { %v1487_v51 = vpop.eup %1486  ;;  %v578_v34 = vadd.f32 %v1485_v24, %v420_v19  ;;  %v550_v36 = vadd.f32 %v2006_v58, %v527_v21 }
  0xe3   :  { %v579_v39 = vadd.f32 %v1487_v51, %v421_v27  ;;  %v551_v40 = vadd.f32 %v2006_v58, %v528_v30  ;;  %v2087_v3 = vpop.permute.xlu0 %352  ;;  %v104_v30 = vld [vmem:[%s2321_s1 + $0x40] sm:$0xff] }
  0xe4   :  { %1492 = vtanh.f32 %v550_v36  ;;  %v2089_v17 = vpop.permute.xlu1 %357  ;;  %v406_v55 = vmul.f32 %v2087_v3, %v2081_v54 }
  0xe5   :  { %1494 = vtanh.f32 %v551_v40  ;;  %v407_v41 = vmul.f32 %v2089_v17, %v2084_v37  ;;  %v592_v44 = vpack.c.bf16 %v579_v39, %v578_v34  ;;  %v105_v34 = vld [vmem:[%s2321_s1 + $0x48] sm:$0xff] }
  0xe6   :  { %v422_v52 = vadd.f32 %v406_v55, %v102_v43 }
  0xe7   :  { %759 = vmatmul.mubr.bf16.gmra.mxu0 %v592_v44  ;;  %v486_v50 = vpop.permute.xlu0 %485  ;;  %v423_v63 = vadd.f32 %v407_v41, %v103_v46  ;;  %v2127_v46 = vld [vmem:[#allocation2 + $0x50] sm:$0xff] }
  0xe8   :  { %v491_v56 = vpop.permute.xlu1 %490  ;;  %v529_v60 = vmul.f32 %v2000_v48, %v486_v50  ;;  %768 = vmatprep.mubr.bf16.mxu0 %v1687_v0 }
  0xe9   :  { %v1489_v23 = vpop.eup %1488  ;;  %v530_v4 = vmul.f32 %v2000_v48, %v491_v56 }
  0xea   :  { %v1491_v15 = vpop.eup %1490  ;;  %v580_v29 = vadd.f32 %v1489_v23, %v422_v52  ;;  %v552_v18 = vadd.f32 %v2006_v58, %v529_v60  ;;  %v2130_v60 = vld [vmem:[#allocation2 + $0x58] sm:$0xff] }
  0xeb   :  { %v581_v8 = vadd.f32 %v1491_v15, %v423_v63  ;;  %v553_v19 = vadd.f32 %v2006_v58, %v530_v4  ;;  %v2110_v20 = vpop.permute.xlu0 %362 }
  0xec   :  { %1496 = vtanh.f32 %v552_v18  ;;  %v2112_v21 = vpop.permute.xlu1 %367  ;;  %v408_v24 = vmul.f32 %v2110_v20, %v2104_v10 }
  0xed   :  { %1498 = vtanh.f32 %v553_v19  ;;  %v409_v27 = vmul.f32 %v2112_v21, %v2107_v9  ;;  %v593_v51 = vpack.c.bf16 %v581_v8, %v580_v29  ;;  %v106_v8 = vld [vmem:[%s2321_s1 + $0x50] sm:$0xff] }
  0xee   :  { %v424_v39 = vadd.f32 %v408_v24, %v104_v30  ;;  %v107_v24 = vld [vmem:[%s2321_s1 + $0x58] sm:$0xff] }
  0xef   :  { %769 = vmatmul.mubr.bf16.gmra.mxu0 %v593_v51  ;;  %v496_v36 = vpop.permute.xlu0 %495  ;;  %v425_v43 = vadd.f32 %v409_v27, %v105_v34 }
  0xf0   :  { %v501_v40 = vpop.permute.xlu1 %500  ;;  %v531_v55 = vmul.f32 %v2000_v48, %v496_v36  ;;  %778 = vmatprep.mubr.bf16.mxu0 %v1687_v0 }
  0xf1   :  { %v1493_v41 = vpop.eup %1492  ;;  %v532_v44 = vmul.f32 %v2000_v48, %v501_v40 }
  0xf2   :  { %v1495_v50 = vpop.eup %1494  ;;  %v582_v52 = vadd.f32 %v1493_v41, %v424_v39  ;;  %v554_v56 = vadd.f32 %v2006_v58, %v531_v55  ;;  %v2150_v55 = vld [vmem:[#allocation2 + $0x60] sm:$0xff] }
  0xf3   :  { %v583_v23 = vadd.f32 %v1495_v50, %v425_v43  ;;  %v555_v63 = vadd.f32 %v2006_v58, %v532_v44  ;;  %v2133_v4 = vpop.permute.xlu0 %372  ;;  %v2153_v50 = vld [vmem:[#allocation2 + $0x68] sm:$0xff] }
  0xf4   :  { %1500 = vtanh.f32 %v554_v56  ;;  %v2135_v15 = vpop.permute.xlu1 %377  ;;  %v410_v29 = vmul.f32 %v2133_v4, %v2127_v46 }
  0xf5   :  { %1502 = vtanh.f32 %v555_v63  ;;  %v411_v18 = vmul.f32 %v2135_v15, %v2130_v60  ;;  %v594_v19 = vpack.c.bf16 %v583_v23, %v582_v52 }
  0xf6   :  { %v426_v30 = vadd.f32 %v410_v29, %v106_v8 }
  0xf7   :  { %779 = vmatmul.mubr.bf16.gmra.mxu0 %v594_v19  ;;  %v506_v27 = vpop.permute.xlu0 %505  ;;  %v427_v39 = vadd.f32 %v411_v18, %v107_v24  ;;  %v108_v18 = vld [vmem:[%s2321_s1 + $0x60] sm:$0xff] }
  0xf8   :  { %v511_v51 = vpop.permute.xlu1 %510  ;;  %v533_v34 = vmul.f32 %v2000_v48, %v506_v27  ;;  %788 = vmatprep.mubr.bf16.mxu0 %v1687_v0 }
  0xf9   :  { %v1497_v36 = vpop.eup %1496  ;;  %v534_v40 = vmul.f32 %v2000_v48, %v511_v51 }
  0xfa   :  { %v1499_v41 = vpop.eup %1498  ;;  %v584_v43 = vadd.f32 %v1497_v36, %v426_v30  ;;  %v556_v44 = vadd.f32 %v2006_v58, %v533_v34  ;;  %v2171_v30 = vld [vmem:[#allocation2 + $0x70] sm:$0xff] }
  0xfb   :  { %v585_v52 = vadd.f32 %v1499_v41, %v427_v39  ;;  %v557_v56 = vadd.f32 %v2006_v58, %v534_v40  ;;  %v2156_v23 = vpop.permute.xlu0 %382  ;;  %v109_v58 = vld [vmem:[%s2321_s1 + $0x68] sm:$0xff]  ;;  %v2175_v39 = vld [vmem:[#allocation2 + $0x78] sm:$0xff] }
  0xfc   :  { %1504 = vtanh.f32 %v556_v44  ;;  %v2158_v63 = vpop.permute.xlu1 %387  ;;  %v412_v29 = vmul.f32 %v2156_v23, %v2150_v55  ;;  %2333 = vst [vmem:[#allocation15_spill] sm:$0xff] %v2175_v39 }
  0xfd   :  { %1506 = vtanh.f32 %v557_v56  ;;  %v413_v48 = vmul.f32 %v2158_v63, %v2153_v50  ;;  %v595_v8 = vpack.c.bf16 %v585_v52, %v584_v43  ;;  %v110_v52 = vld [vmem:[%s2321_s1 + $0x70] sm:$0xff] }
  0xfe   :  { %v428_v19 = vadd.f32 %v412_v29, %v108_v18  ;;  %v111_v29 = vld [vmem:[%s2321_s1 + $0x78] sm:$0xff] }
  0xff   :  { %789 = vmatmul.mubr.bf16.gmra.mxu0 %v595_v8  ;;  %v429_v27 = vadd.f32 %v413_v48, %v109_v58  ;;  %v2173_v51 = vpop.permute.xlu0 %392 }
 0x100   :  { %798 = vmatprep.mubr.bf16.mxu0 %v1687_v0  ;;  %v2177_v40 = vpop.permute.xlu1 %397  ;;  %v414_v43 = vmul.f32 %v2173_v51, %v2171_v30 }
 0x101   :  { %v1501_v24 = vpop.eup %1500  ;;  %2334 = vst [vmem:[#allocation16_spill] sm:$0xff] %v2177_v40  ;;  %v415_v44 = vmul.f32 %v2177_v40, %v2175_v39  ;;  %v1401_v39 = vld [vmem:[#allocation7 + $0x28] sm:$0xff]   ;;  %v1404_v40 = vld [vmem:[#allocation7 + $0x58] sm:$0xff]  }
 0x102   :  { %v1503_v34 = vpop.eup %1502  ;;  %v586_v36 = vadd.f32 %v1501_v24, %v428_v19  ;;  %v430_v48 = vadd.f32 %v414_v43, %v110_v52  ;;  %v1407_v43 = vld [vmem:[#allocation7 + $0x10] sm:$0xff]   ;;  %v1409_v52 = vld [vmem:[#allocation7 + $0x8] sm:$0xff]  }
 0x103   :  { %v587_v41 = vadd.f32 %v1503_v34, %v429_v27  ;;  %v431_v8 = vadd.f32 %v415_v44, %v111_v29  ;;  %v1400_v34 = vld [vmem:[#allocation7 + $0x68] sm:$0xff]   ;;  %v1410_v29 = vld [vmem:[#allocation7 + $0x40] sm:$0xff]  }
 0x104   :  { %1298 = vmatprep.subr.bf16.mxu1 %v1400_v34  ;;  %v1408_v44 = vld [vmem:[#allocation7 + $0x48] sm:$0xff]  }
 0x105   :  { %v596_v56 = vpack.c.bf16 %v587_v41, %v586_v36  ;;  %1299 = vmatpush3.bf16.msra.mxu1 %v1401_v39  ;;  %v1402_v36 = vld [vmem:[#allocation7 + $0x60] sm:$0xff]   ;;  %v1170_v39 = vsel %vm1169_vm0, %v1816_v45, 0.0 }
 0x106   :  { %v1403_v41 = vld [vmem:[#allocation7 + $0x20] sm:$0xff]   ;;  %1300 = vmatprep.subr.bf16.mxu1 %v1402_v36  ;;  %v1179_v36 = vsel %vm1169_vm0, %v1853_v6, 0.0 }
 0x107   :  { %799 = vmatmul.mubr.bf16.gmra.mxu0 %v596_v56  ;;  %v1405_v56 = vld [vmem:[#allocation7 + $0x18] sm:$0xff]  }
 0x108   :  { %808 = vmatprep.mubr.bf16.mxu0 %v1687_v0  ;;  %v1406_v0 = vld [vmem:[#allocation7 + $0x50] sm:$0xff]  }
 0x109   :  { %v1505_v18 = vpop.eup %1504  ;;  %1301 = vmatpush3.bf16.msra.mxu1 %v1403_v41 }
 0x10a   :  { %v1507_v58 = vpop.eup %1506  ;;  %v588_v19 = vadd.f32 %v1505_v18, %v430_v48  ;;  %1302 = vmatprep.subr.bf16.mxu1 %v1404_v40  ;;  %v1411_v48 = vld [vmem:[#allocation7] sm:$0xff]   ;;  %v1171_v40 = vsel %vm1169_vm0, %v1819_v49, 0.0  ;;  %v1181_v49 = vsel %vm1169_vm0, %v1859_v26, 0.0 }
 0x10b   :  { %v589_v24 = vadd.f32 %v1507_v58, %v431_v8  ;;  %v1172_v18 = vadd.f32 %v1171_v40, %v1170_v39  ;;  %v1173_v8 = vsel %vm1169_vm0, %v1826_v53, 0.0  ;;  %v1183_v53 = vsel %vm1169_vm0, %v1863_v31, 0.0 }
 0x10d   :  { %v597_v27 = vpack.c.bf16 %v589_v24, %v588_v19  ;;  %1303 = vmatpush3.bf16.msra.mxu1 %v1405_v56  ;;  %v1174_v58 = vadd.f32 %v1173_v8, %v1172_v18  ;;  %v1175_v19 = vsel %vm1169_vm0, %v1839_v57, 0.0  ;;  %v1185_v57 = vsel %vm1169_vm0, %v1889_v61, 0.0 }
 0x10e   :  { %1304 = vmatprep.subr.bf16.mxu1 %v1406_v0 }
 0x10f   :  { %809 = vmatmul.mubr.bf16.gmra.mxu0 %v597_v27  ;;  %v1176_v24 = vadd.f32 %v1175_v19, %v1174_v58  ;;  %v1177_v27 = vsel %vm1169_vm0, %v1845_v2, 0.0  ;;  %v1187_v2 = vsel %vm1169_vm0, %v1897_v7, 0.0 }
 0x111   :  { %1305 = vmatpush3.bf16.msra.mxu1 %v1407_v43  ;;  %v1178_v34 = vadd.f32 %v1177_v27, %v1176_v24  ;;  %v1189_v43 = vsel %vm1169_vm0, %v1916_v22, 0.0  ;;  %v1199_v22 = vsel %vm1169_vm0, %v1949_v62, 0.0 }
 0x112   :  { %1306 = vmatprep.subr.bf16.mxu1 %v1408_v44  ;;  %v1191_v44 = vsel %vm1169_vm0, %v1921_v28, 0.0  ;;  %v616_v28 = vlaneseq }
 0x113   :  { %v1180_v45 = vadd.f32 %v1179_v36, %v1178_v34 }
 0x114   :  { %v617_v18 = vshrl.u32 %v616_v28, 7 }
 0x115   :  { %1307 = vmatpush3.bf16.msra.mxu1 %v1409_v52  ;;  %v1182_v41 = vadd.f32 %v1181_v49, %v1180_v45  ;;  %v1193_v52 = vsel %vm1169_vm0, %v1935_v42, 0.0  ;;  %v614_v42 = vld [vmem:[%s2326_s6] sm:$0x3]  ;;  %s1688_s6 = smov [#allocation8]  }
 0x116   :  { %1308 = vmatprep.subr.bf16.mxu1 %v1410_v29  ;;  %v1195_v29 = vsel %vm1169_vm0, %v1939_v47, 0.0  ;;  %v622_v8 = vsub.s32 1, %v617_v18  ;;  %v618_v58 = vsub.s32 0, %v617_v18  ;;  %s1219_s26 = sshll.u32 %s1688_s6, 4  ;;  %s1220_s26 = int_to_ptr.vmem [resolvable:$true] %s1219_s26 }
 0x117   :  { %v1184_v56 = vadd.f32 %v1183_v53, %v1182_v41  ;;  %s1632_s5 = scalar_lea.vmem %s1220_s26, 16  ;;  %s1636_s28 = scalar_lea.vmem %s1220_s26, 32 }
 0x118   :  { %v2225_v47 = vrot.slane %v614_v42, %v622_v8  ;;  %v2227_v24 = vrot.slane %v614_v42, %v618_v58  ;;  %p1633_p1 = scmp.ne.s32.totalorder %s1220_s26, %s1632_s5  ;;  %p1637_p2 = scmp.lt.s32.totalorder %s1220_s26, %s1220_s26 }
 0x119   :  { %1309 = vmatpush3.bf16.msra.mxu1 %v1411_v48  ;;  %v1186_v0 = vadd.f32 %v1185_v57, %v1184_v56  ;;  %v1197_v48 = vsel %vm1169_vm0, %v1944_v59, 0.0  ;;  %p1638_p3 = scmp.lt.s32.totalorder %s1636_s28, %s1632_s5 }
 0x11b   :  { %v1188_v6 = vadd.f32 %v1187_v2, %v1186_v0  ;;  %p1639_p4 = por %p1638_p3, %p1637_p2 }
 0x11d   :  { %v1190_v26 = vadd.f32 %v1189_v43, %v1188_v6  ;;  %p1640_p5 = pnand %p1639_p4, %p1633_p1 }
 0x11f   :  { %v1192_v31 = vadd.f32 %v1191_v44, %v1190_v26 }
 0x121   :  { %v1194_v61 = vadd.f32 %v1193_v52, %v1192_v31 }
 0x123   :  { %v1196_v7 = vadd.f32 %v1195_v29, %v1194_v61 }
 0x125   :  { %v1198_v39 = vadd.f32 %v1197_v48, %v1196_v7 }
 0x127   :  { %v1200_v40 = vadd.f32 %v1199_v22, %v1198_v39 }
 0x129   :  { %1201 = vadd.xlane.f32.xlu0 %v1200_v40 }
 0x195   :  { %v740_v19 = vpop.f32.mrf.mxu0 }
 0x196   :  { %v741_v36 = vadd.f32 %v740_v19, %v2227_v24 }
 0x197   :  { %v742_v59 = vpop.f32.mrf.mxu0 }
 0x198   :  { %v743_v27 = vadd.f32 %v742_v59, %v2225_v47 }
 0x199   :  { %v744_v62 = vpop.f32.mrf.mxu0 }
 0x19a   :  { %v745_v34 = vadd.f32 %v744_v62, %v2227_v24  ;;  %1508 = vtanh.f32 %v743_v27 }
 0x19b   :  { %v746_v45 = vpop.f32.mrf.mxu0 }
 0x19c   :  { %v747_v49 = vadd.f32 %v746_v45, %v2225_v47  ;;  %1510 = vtanh.f32 %v745_v34 }
 0x19d   :  { %v750_v41 = vpop.f32.mrf.mxu0 }
 0x19e   :  { %1512 = vtanh.f32 %v747_v49  ;;  %v751_v2 = vadd.f32 %v750_v41, %v2227_v24 }
 0x19f   :  { %1514 = vtanh.f32 %v741_v36  ;;  %v752_v53 = vpop.f32.mrf.mxu0 }
 0x1a0   :  { %v753_v56 = vadd.f32 %v752_v53, %v2225_v47 }
 0x1a1   :  { %v754_v57 = vpop.f32.mrf.mxu0 }
 0x1a2   :  { %v755_v0 = vadd.f32 %v754_v57, %v2227_v24  ;;  %1516 = vtanh.f32 %v753_v56 }
 0x1a3   :  { %v756_v43 = vpop.f32.mrf.mxu0 }
 0x1a4   :  { %v757_v6 = vadd.f32 %v756_v43, %v2225_v47  ;;  %1518 = vtanh.f32 %v755_v0 }
 0x1a6   :  { %1520 = vtanh.f32 %v757_v6 }
 0x1a7   :  { %1522 = vtanh.f32 %v751_v2  ;;  %v760_v44 = vpop.f32.mrf.mxu0  ;;  %v1509_v26 = vpop.eup %1508 }
 0x1a8   :  { %v761_v40 = vadd.f32 %v760_v44, %v2227_v24 }
 0x1a9   :  { %v762_v52 = vpop.f32.mrf.mxu0  ;;  %v1511_v31 = vpop.eup %1510 }
 0x1aa   :  { %v763_v29 = vadd.f32 %v762_v52, %v2225_v47 }
 0x1ab   :  { %v1513_v61 = vpop.eup %1512  ;;  %v764_v48 = vpop.f32.mrf.mxu0 }
 0x1ac   :  { %v1515_v7 = vpop.eup %1514  ;;  %v765_v22 = vadd.f32 %v764_v48, %v2227_v24  ;;  %v852_v39 = vpack.c.bf16 %v1513_v61, %v1509_v26  ;;  %1524 = vtanh.f32 %v763_v29 }
 0x1ad   :  { %v766_v28 = vpop.f32.mrf.mxu0  ;;  %v851_v18 = vpack.c.bf16 %v1511_v31, %v1515_v7 }
 0x1ae   :  { %v767_v8 = vadd.f32 %v766_v28, %v2225_v47  ;;  %1034 = vmatprep.mubr.bf16.mxu1 %v852_v39  ;;  %1526 = vtanh.f32 %v765_v22 }
 0x1af   :  { %v770_v42 = vpop.f32.mrf.mxu0  ;;  %1035 = vmatmul.mubr.bf16.vlgmr.msra.gmra.mxu1 %v851_v18  ;;  %v1517_v58 = vpop.eup %1516 }
 0x1b0   :  { %1528 = vtanh.f32 %v767_v8  ;;  %v771_v41 = vadd.f32 %v770_v42, %v2227_v24 }
 0x1b1   :  { %1530 = vtanh.f32 %v761_v40  ;;  %v772_v19 = vpop.f32.mrf.mxu0  ;;  %v1519_v59 = vpop.eup %1518 }
 0x1b2   :  { %v773_v27 = vadd.f32 %v772_v19, %v2225_v47 }
 0x1b3   :  { %v1521_v62 = vpop.eup %1520  ;;  %v774_v34 = vpop.f32.mrf.mxu0 }
 0x1b4   :  { %v1523_v36 = vpop.eup %1522  ;;  %v775_v45 = vadd.f32 %v774_v34, %v2227_v24  ;;  %v854_v49 = vpack.c.bf16 %v1521_v62, %v1517_v58  ;;  %1532 = vtanh.f32 %v773_v27 }
 0x1b5   :  { %v776_v53 = vpop.f32.mrf.mxu0  ;;  %v853_v56 = vpack.c.bf16 %v1519_v59, %v1523_v36 }
 0x1b6   :  { %v777_v57 = vadd.f32 %v776_v53, %v2225_v47  ;;  %1042 = vmatprep.mubr.bf16.mxu1 %v854_v49  ;;  %1534 = vtanh.f32 %v775_v45 }
 0x1b7   :  { %v780_v0 = vpop.f32.mrf.mxu0  ;;  %1043 = vmatmul.mubr.bf16.gmra.mxu1 %v853_v56 }
 0x1b8   :  { %1536 = vtanh.f32 %v777_v57  ;;  %v781_v29 = vadd.f32 %v780_v0, %v2227_v24 }
 0x1b9   :  { %1538 = vtanh.f32 %v771_v41  ;;  %v782_v2 = vpop.f32.mrf.mxu0  ;;  %v1525_v6 = vpop.eup %1524 }
 0x1ba   :  { %v783_v43 = vadd.f32 %v782_v2, %v2225_v47 }
 0x1bb   :  { %v784_v44 = vpop.f32.mrf.mxu0  ;;  %v1527_v26 = vpop.eup %1526 }
 0x1bc   :  { %v785_v52 = vadd.f32 %v784_v44, %v2227_v24  ;;  %1540 = vtanh.f32 %v783_v43 }
 0x1bd   :  { %v1529_v31 = vpop.eup %1528  ;;  %v786_v61 = vpop.f32.mrf.mxu0 }
 0x1be   :  { %v1531_v48 = vpop.eup %1530  ;;  %v787_v7 = vadd.f32 %v786_v61, %v2225_v47  ;;  %v856_v22 = vpack.c.bf16 %v1529_v31, %v1525_v6  ;;  %1542 = vtanh.f32 %v785_v52 }
 0x1bf   :  { %v790_v39 = vpop.f32.mrf.mxu0  ;;  %v855_v40 = vpack.c.bf16 %v1527_v26, %v1531_v48 }
 0x1c0   :  { %1544 = vtanh.f32 %v787_v7  ;;  %1050 = vmatprep.mubr.bf16.mxu1 %v856_v22  ;;  %v791_v27 = vadd.f32 %v790_v39, %v2227_v24 }
 0x1c1   :  { %1546 = vtanh.f32 %v781_v29  ;;  %v792_v28 = vpop.f32.mrf.mxu0  ;;  %1051 = vmatmul.mubr.bf16.gmra.mxu1 %v855_v40  ;;  %v1533_v8 = vpop.eup %1532 }
 0x1c2   :  { %v793_v18 = vadd.f32 %v792_v28, %v2225_v47 }
 0x1c3   :  { %v794_v42 = vpop.f32.mrf.mxu0  ;;  %v1535_v58 = vpop.eup %1534 }
 0x1c4   :  { %v795_v19 = vadd.f32 %v794_v42, %v2227_v24  ;;  %1548 = vtanh.f32 %v793_v18 }
 0x1c5   :  { %v1537_v59 = vpop.eup %1536  ;;  %v796_v62 = vpop.f32.mrf.mxu0 }
 0x1c6   :  { %v1539_v34 = vpop.eup %1538  ;;  %v797_v36 = vadd.f32 %v796_v62, %v2225_v47  ;;  %v858_v45 = vpack.c.bf16 %v1537_v59, %v1533_v8  ;;  %1550 = vtanh.f32 %v795_v19 }
 0x1c7   :  { %v800_v49 = vpop.f32.mrf.mxu0  ;;  %v857_v41 = vpack.c.bf16 %v1535_v58, %v1539_v34 }
 0x1c8   :  { %1552 = vtanh.f32 %v797_v36  ;;  %1058 = vmatprep.mubr.bf16.mxu1 %v858_v45  ;;  %v801_v44 = vadd.f32 %v800_v49, %v2227_v24 }
 0x1c9   :  { %1554 = vtanh.f32 %v791_v27  ;;  %v802_v53 = vpop.f32.mrf.mxu0  ;;  %1059 = vmatmul.mubr.bf16.gmra.mxu1 %v857_v41  ;;  %v1541_v57 = vpop.eup %1540 }
 0x1ca   :  { %v803_v56 = vadd.f32 %v802_v53, %v2225_v47 }
 0x1cb   :  { %v804_v0 = vpop.f32.mrf.mxu0  ;;  %v1543_v2 = vpop.eup %1542 }
 0x1cc   :  { %v805_v43 = vadd.f32 %v804_v0, %v2227_v24  ;;  %1556 = vtanh.f32 %v803_v56 }
 0x1cd   :  { %v1545_v6 = vpop.eup %1544  ;;  %v806_v26 = vpop.f32.mrf.mxu0 }
 0x1ce   :  { %v1547_v52 = vpop.eup %1546  ;;  %v807_v31 = vadd.f32 %v806_v26, %v2225_v47  ;;  %v860_v29 = vpack.c.bf16 %v1545_v6, %v1541_v57  ;;  %1558 = vtanh.f32 %v805_v43  ;;  %v1202_v43 = vpop.xlane.xlu0 %1201 }
 0x1cf   :  { %v810_v61 = vpop.f32.mrf.mxu0  ;;  %v859_v48 = vpack.c.bf16 %v1543_v2, %v1547_v52  ;;  %v1203_v6 = vrot.slane %v1202_v43, 4 }
 0x1d0   :  { %1560 = vtanh.f32 %v807_v31  ;;  %1066 = vmatprep.mubr.bf16.mxu1 %v860_v29  ;;  %v811_v42 = vadd.f32 %v810_v61, %v2227_v24 }
 0x1d1   :  { %1562 = vtanh.f32 %v801_v44  ;;  %v812_v7 = vpop.f32.mrf.mxu0  ;;  %1067 = vmatmul.mubr.bf16.gmra.mxu1 %v859_v48  ;;  %v1549_v39 = vpop.eup %1548  ;;  %v1204_v44 = vadd.f32 %v1203_v6, %v1202_v43 }
 0x1d2   :  { %v813_v22 = vadd.f32 %v812_v7, %v2225_v47 }
 0x1d3   :  { %v814_v40 = vpop.f32.mrf.mxu0  ;;  %v1551_v28 = vpop.eup %1550  ;;  %v1205_v26 = vrot.slane %v1204_v44, 2 }
 0x1d4   :  { %v815_v18 = vadd.f32 %v814_v40, %v2227_v24  ;;  %1564 = vtanh.f32 %v813_v22 }
 0x1d5   :  { %v1553_v8 = vpop.eup %1552  ;;  %v816_v58 = vpop.f32.mrf.mxu0  ;;  %v1206_v52 = vadd.f32 %v1205_v26, %v1204_v44 }
 0x1d6   :  { %v1555_v19 = vpop.eup %1554  ;;  %v817_v59 = vadd.f32 %v816_v58, %v2225_v47  ;;  %v862_v27 = vpack.c.bf16 %v1553_v8, %v1549_v39  ;;  %1566 = vtanh.f32 %v815_v18 }
 0x1d7   :  { %v861_v62 = vpack.c.bf16 %v1551_v28, %v1555_v19  ;;  %v1207_v31 = vrot.slane %v1206_v52, 1 }
 0x1d8   :  { %1568 = vtanh.f32 %v817_v59  ;;  %1074 = vmatprep.mubr.bf16.mxu1 %v862_v27 }
 0x1d9   :  { %1570 = vtanh.f32 %v811_v42  ;;  %1075 = vmatmul.mubr.bf16.gmra.mxu1 %v861_v62  ;;  %v1557_v34 = vpop.eup %1556  ;;  %v1208_v29 = vadd.f32 %v1207_v31, %v1206_v52 }
 0x1db   :  { %v1559_v36 = vpop.eup %1558  ;;  %1358 = vpush %v1208_v29 }
 0x1dd   :  { %v1561_v45 = vpop.eup %1560 }
 0x1de   :  { %v1563_v49 = vpop.eup %1562  ;;  %v864_v41 = vpack.c.bf16 %v1561_v45, %v1557_v34 }
 0x1df   :  { %v863_v53 = vpack.c.bf16 %v1559_v36, %v1563_v49 }
 0x1e0   :  { %1082 = vmatprep.mubr.bf16.mxu1 %v864_v41 }
 0x1e1   :  { %1083 = vmatmul.mubr.bf16.gmra.mxu1 %v863_v53  ;;  %v1565_v24 = vpop.eup %1564 }
 0x1e3   :  { %v1567_v56 = vpop.eup %1566 }
 0x1e5   :  { %v1569_v57 = vpop.eup %1568 }
 0x1e6   :  { %v1571_v0 = vpop.eup %1570  ;;  %v866_v47 = vpack.c.bf16 %v1569_v57, %v1565_v24 }
 0x1e7   :  { %v865_v2 = vpack.c.bf16 %v1567_v56, %v1571_v0 }
 0x1e8   :  { %1090 = vmatprep.mubr.bf16.mxu1 %v866_v47 }
 0x1e9   :  { %1091 = vmatmul.mubr.bf16.gmra.mxu1 %v865_v2 }
 0x20c   :  { %s1359_s27 = spop %1358 }
 0x20d   :  { %v1210_v61 = vstv %s1359_s27 }
 0x20e   :  { %1212 = vst.msk [vmem:[#allocation8] sm:$0x1] %vm1211_vm1, %v1210_v61 }
 0x20f   :  { %1643 = shalt.err (!%p1640_p5)
}
 0x210   :  { %1222 = dma.vmem_to_hbm [thread:$0]  %s1220_s26, 16, %s2329_s9, [#allocation4]   ;;  %v2267_v36 = vld [vmem:[%s2328_s8] ss:$0 sm:$0xff] }
 0x211   :  { %s1689_s8 = smov [#allocation9]  }
 0x212   :  { %s1229_s9 = sshll.u32 %s1689_s8, 4  ;;  %s1230_s9 = int_to_ptr.vmem [resolvable:$true] %s1229_s9 }
 0x213   :  { %s1652_s12 = scalar_lea.vmem %s1230_s9, 16  ;;  %s1656_s13 = scalar_lea.vmem %s1230_s9, 32 }
 0x214   :  { %p1653_p6 = scmp.ne.s32.totalorder %s1230_s9, %s1652_s12  ;;  %p1657_p7 = scmp.lt.s32.totalorder %s1230_s9, %s1230_s9 }
 0x215   :  { %p1658_p8 = scmp.lt.s32.totalorder %s1656_s13, %s1652_s12 }
 0x217   :  { %p1659_p9 = por %p1658_p8, %p1657_p7 }
 0x219   :  { %p1660_p10 = pnand %p1659_p9, %p1653_p6 }
 0x26f   :  { %v1310_v48 = vpop.f32.mrf.mxu1 }
 0x271   :  { %v1311_v7 = vpop.f32.mrf.mxu1 }
 0x272   :  { %v1312_v34 = vadd.f32 %v1311_v7, %v1310_v48 }
 0x273   :  { %v1313_v22 = vpop.f32.mrf.mxu1 }
 0x274   :  { %v1037_v56 = vadd.f32 %v1312_v34, %v2267_v36 }
 0x275   :  { %v1314_v39 = vpop.f32.mrf.mxu1 }
 0x276   :  { %v1315_v27 = vadd.f32 %v1314_v39, %v1313_v22  ;;  %v1099_v26 = vmul.f32 %v1037_v56, %v2022_v14 }
 0x277   :  { %v1316_v40 = vpop.f32.mrf.mxu1 }
 0x278   :  { %v1040_v41 = vadd.f32 %v1315_v27, %v2267_v36 }
 0x279   :  { %v1317_v28 = vpop.f32.mrf.mxu1 }
 0x27a   :  { %v1318_v45 = vadd.f32 %v1317_v28, %v1316_v40  ;;  %v1100_v2 = vmul.f32 %v1040_v41, %v2027_v33  ;;  %v1115_v40 = vsub.f32 %v2015_v11, %v1099_v26 }
 0x27b   :  { %v1319_v18 = vpop.f32.mrf.mxu1 }
 0x27c   :  { %v1045_v57 = vadd.f32 %v1318_v45, %v2267_v36  ;;  %v1116_v48 = vsub.f32 %v2017_v12, %v1100_v2 }
 0x27d   :  { %v1320_v8 = vpop.f32.mrf.mxu1 }
 0x27e   :  { %v1321_v53 = vadd.f32 %v1320_v8, %v1319_v18  ;;  %v1101_v52 = vmul.f32 %v1045_v57, %v2044_v38 }
 0x280   :  { %v1048_v43 = vadd.f32 %v1321_v53, %v2267_v36  ;;  %v1117_v28 = vsub.f32 %v2035_v32, %v1101_v52 }
 0x281   :  { %v1322_v42 = vpop.f32.mrf.mxu1 }
 0x282   :  { %v1102_v7 = vmul.f32 %v1048_v43, %v2049_v16 }
 0x283   :  { %v1323_v58 = vpop.f32.mrf.mxu1 }
 0x284   :  { %v1324_v0 = vadd.f32 %v1323_v58, %v1322_v42  ;;  %v1132_v42 = vmul.f32 %v1116_v48, %v1116_v48  ;;  %v1118_v58 = vsub.f32 %v2038_v35, %v1102_v7 }
 0x285   :  { %v1325_v19 = vpop.f32.mrf.mxu1 }
 0x286   :  { %v1053_v31 = vadd.f32 %v1324_v0, %v2267_v36  ;;  %v1134_v41 = vmul.f32 %v1118_v58, %v1118_v58 }
 0x287   :  { %v1326_v59 = vpop.f32.mrf.mxu1 }
 0x288   :  { %v1327_v6 = vadd.f32 %v1326_v59, %v1325_v19  ;;  %v1103_v14 = vmul.f32 %v1053_v31, %v2064_v5  ;;  %v1131_v59 = vmul.f32 %v1115_v40, %v1115_v40 }
 0x289   :  { %v1328_v62 = vpop.f32.mrf.mxu1 }
 0x28a   :  { %v1056_v22 = vadd.f32 %v1327_v6, %v2267_v36  ;;  %v1119_v11 = vsub.f32 %v2058_v25, %v1103_v14 }
 0x28b   :  { %v1329_v49 = vpop.f32.mrf.mxu1 }
 0x28c   :  { %v1330_v29 = vadd.f32 %v1329_v49, %v1328_v62  ;;  %v1104_v12 = vmul.f32 %v1056_v22, %v2066_v13  ;;  %v1133_v62 = vmul.f32 %v1117_v28, %v1117_v28  ;;  %v1147_v49 = vadd.f32 %v1132_v42, %v1131_v59 }
 0x28d   :  { %v1331_v24 = vpop.f32.mrf.mxu1  ;;  %v1135_v57 = vmul.f32 %v1119_v11, %v1119_v11 }
 0x28e   :  { %v1061_v38 = vadd.f32 %v1330_v29, %v2267_v36  ;;  %v1120_v35 = vsub.f32 %v2061_v1, %v1104_v12  ;;  %v1148_v56 = vadd.f32 %v1147_v49, %v1133_v62 }
 0x28f   :  { %v1332_v47 = vpop.f32.mrf.mxu1 }
 0x290   :  { %v1333_v39 = vadd.f32 %v1332_v47, %v1331_v24  ;;  %v1105_v32 = vmul.f32 %v1061_v38, %v2087_v3  ;;  %v1149_v43 = vadd.f32 %v1148_v56, %v1134_v41  ;;  %v1136_v6 = vmul.f32 %v1120_v35, %v1120_v35 }
 0x291   :  { %v1334_v44 = vpop.f32.mrf.mxu1 }
 0x292   :  { %v1064_v16 = vadd.f32 %v1333_v39, %v2267_v36  ;;  %v1121_v0 = vsub.f32 %v2081_v54, %v1105_v32  ;;  %v1150_v52 = vadd.f32 %v1149_v43, %v1135_v57 }
 0x293   :  { %v1335_v61 = vpop.f32.mrf.mxu1 }
 0x294   :  { %v1336_v18 = vadd.f32 %v1335_v61, %v1334_v44  ;;  %v1106_v13 = vmul.f32 %v1064_v16, %v2089_v17  ;;  %v1137_v31 = vmul.f32 %v1121_v0, %v1121_v0  ;;  %v1151_v48 = vadd.f32 %v1150_v52, %v1136_v6 }
 0x295   :  { %v1337_v33 = vpop.f32.mrf.mxu1 }
 0x296   :  { %v1069_v5 = vadd.f32 %v1336_v18, %v2267_v36  ;;  %v1122_v44 = vsub.f32 %v2084_v37, %v1106_v13 }
 0x297   :  { %v1338_v8 = vpop.f32.mrf.mxu1 }
 0x298   :  { %v1339_v27 = vadd.f32 %v1338_v8, %v1337_v33  ;;  %v1107_v25 = vmul.f32 %v1069_v5, %v2110_v20  ;;  %v1138_v7 = vmul.f32 %v1122_v44, %v1122_v44 }
 0x299   :  { %v1340_v19 = vpop.f32.mrf.mxu1 }
 0x29a   :  { %v1072_v24 = vadd.f32 %v1339_v27, %v2267_v36  ;;  %v1123_v29 = vsub.f32 %v2104_v10, %v1107_v25 }
 0x29b   :  { %v1341_v34 = vpop.f32.mrf.mxu1 }
 0x29c   :  { %v1342_v45 = vadd.f32 %v1341_v34, %v1340_v19  ;;  %v1108_v17 = vmul.f32 %v1072_v24, %v2112_v21  ;;  %v1152_v21 = vadd.f32 %v1151_v48, %v1137_v31  ;;  %v1139_v40 = vmul.f32 %v1123_v29, %v1123_v29 }
 0x29d   :  { %v1343_v53 = vpop.f32.mrf.mxu1 }
 0x29e   :  { %v1077_v47 = vadd.f32 %v1342_v45, %v2267_v36  ;;  %v1124_v39 = vsub.f32 %v2107_v9, %v1108_v17  ;;  %v1153_v18 = vadd.f32 %v1152_v21, %v1138_v7 }
 0x29f   :  { %v1344_v3 = vpop.f32.mrf.mxu1 }
 0x2a0   :  { %v1345_v2 = vadd.f32 %v1344_v3, %v1343_v53  ;;  %v1109_v20 = vmul.f32 %v1077_v47, %v2133_v4  ;;  %v1140_v8 = vmul.f32 %v1124_v39, %v1124_v39  ;;  %v1154_v9 = vadd.f32 %v1153_v18, %v1139_v40  ;;  %v2335_v53 = vld [vmem:[#allocation16_spill] sm:$0xff] }
 0x2a1   :  { %v1346_v1 = vpop.f32.mrf.mxu1 }
 0x2a2   :  { %v1080_v26 = vadd.f32 %v1345_v2, %v2267_v36  ;;  %v1125_v14 = vsub.f32 %v2127_v46, %v1109_v20  ;;  %v1155_v46 = vadd.f32 %v1154_v9, %v1140_v8 }
 0x2a3   :  { %v1347_v54 = vpop.f32.mrf.mxu1 }
 0x2a4   :  { %v1348_v61 = vadd.f32 %v1347_v54, %v1346_v1  ;;  %v1110_v37 = vmul.f32 %v1080_v26, %v2135_v15  ;;  %v1141_v15 = vmul.f32 %v1125_v14, %v1125_v14 }
 0x2a5   :  { %v1349_v22 = vpop.f32.mrf.mxu1 }
 0x2a6   :  { %v1085_v33 = vadd.f32 %v1348_v61, %v2267_v36  ;;  %v1126_v42 = vsub.f32 %v2130_v60, %v1110_v37  ;;  %v1156_v5 = vadd.f32 %v1155_v46, %v1141_v15 }
 0x2a7   :  { %v1350_v28 = vpop.f32.mrf.mxu1 }
 0x2a8   :  { %v1111_v10 = vmul.f32 %v1085_v33, %v2156_v23  ;;  %v1351_v38 = vadd.f32 %v1350_v28, %v1349_v22  ;;  %v1142_v62 = vmul.f32 %v1126_v42, %v1126_v42 }
 0x2a9   :  { %v1352_v4 = vpop.f32.mrf.mxu1 }
 0x2aa   :  { %v1088_v58 = vadd.f32 %v1351_v38, %v2267_v36  ;;  %v1127_v16 = vsub.f32 %v2150_v55, %v1111_v10  ;;  %v1157_v49 = vadd.f32 %v1156_v5, %v1142_v62 }
 0x2ab   :  { %v1353_v12 = vpop.f32.mrf.mxu1 }
 0x2ac   :  { %v1112_v19 = vmul.f32 %v1088_v58, %v2158_v63  ;;  %v1354_v59 = vadd.f32 %v1353_v12, %v1352_v4  ;;  %v1143_v60 = vmul.f32 %v1127_v16, %v1127_v16 }
 0x2ad   :  { %v1355_v27 = vpop.f32.mrf.mxu1 }
 0x2ae   :  { %v1128_v23 = vsub.f32 %v2153_v50, %v1112_v19  ;;  %v1093_v11 = vadd.f32 %v1354_v59, %v2267_v36  ;;  %v1158_v35 = vadd.f32 %v1157_v49, %v1143_v60  ;;  %v2336_v50 = vld [vmem:[#allocation15_spill] sm:$0xff] }
 0x2af   :  { %v1356_v32 = vpop.f32.mrf.mxu1 }
 0x2b0   :  { %v1113_v34 = vmul.f32 %v1093_v11, %v2173_v51  ;;  %v1357_v45 = vadd.f32 %v1356_v32, %v1355_v27  ;;  %v1144_v41 = vmul.f32 %v1128_v23, %v1128_v23 }
 0x2b2   :  { %v1129_v55 = vsub.f32 %v2171_v30, %v1113_v34  ;;  %v1096_v63 = vadd.f32 %v1357_v45, %v2267_v36  ;;  %v1159_v56 = vadd.f32 %v1158_v35, %v1144_v41 }
 0x2b4   :  { %v1145_v13 = vmul.f32 %v1129_v55, %v1129_v55  ;;  %v1114_v24 = vmul.f32 %v1096_v63, %v2335_v53 }
 0x2b6   :  { %v1130_v57 = vsub.f32 %v2336_v50, %v1114_v24  ;;  %v1160_v0 = vadd.f32 %v1159_v56, %v1145_v13 }
 0x2b8   :  { %v1146_v25 = vmul.f32 %v1130_v57, %v1130_v57 }
 0x2ba   :  { %v1161_v3 = vadd.f32 %v1160_v0, %v1146_v25 }
 0x2bc   :  { %v1162_v47 = vrot.slane %v1161_v3, 4 }
 0x2be   :  { %v1163_v2 = vadd.f32 %v1162_v47, %v1161_v3 }
 0x2c0   :  { %v1164_v51 = vrot.slane %v1163_v2, 2 }
 0x2c2   :  { %v1165_v43 = vadd.f32 %v1164_v51, %v1163_v2 }
 0x2c4   :  { %v1166_v6 = vrot.slane %v1165_v43, 1 }
 0x2c6   :  { %v1167_v30 = vadd.f32 %v1166_v6, %v1165_v43 }
 0x2c8   :  { %1168 = vst [vmem:[#allocation9] sm:$0x1] %v1167_v30 }
 0x2c9   :  { %1663 = shalt.err (!%p1660_p10)
}
 0x2ca   :  { %1232 = dma.vmem_to_hbm [thread:$0]  %s1230_s9, 16, %s2330_s10, [#allocation10]  }
 0x2cb   :  { %1676 = dma.done.wait [#allocation4], 16  }
 0x2cc   :  { %1677 = vsyncadd [#allocation4], 4294967280 }
 0x2cd   :  { %1678 = dma.done.wait [#allocation10], 16  }
 0x2ce   :  { %1679 = vsyncadd [#allocation10], 4294967280 }
 0x2cf   :  { %1239 = vsyncpa [#allocation3], 1 }
 0x2d0   :  { %1240 = vsyncpa [#allocation6], 1 }
 0x2d1   :  { %1241 = vsyncpa [#allocation4], 1 }
 0x2d2   :  { %1242 = vsyncpa [#allocation10], 1 }

</bundles_post_ra>
